<compile_context>
chip_gen: v7x
topology: tpu7x:2x2x1
jax: 0.10.0
libtpu: 0.0.40
codegen_flags: <defaults>
</compile_context>

<pallas_src>
import functools

import jax
import jax.numpy as jnp
from jax import lax
from jax.experimental import pallas as pl
from jax.experimental.pallas import tpu as pltpu


def _divided_temporal_attn_kernel(x_ref, lnw_ref, lnb_ref,
                                  wq_ref, bq_ref, wk_ref, bk_ref, wv_ref, bv_ref,
                                  projw_ref, projb_ref, tfcw_ref, tfcb_ref,
                                  out_ref, o_scratch,
                                  *, num_heads, head_dim, eps):
    Bt, T, C = x_ref.shape
    M = Bt * T

    # ---- pre-norm LayerNorm (f32 statistics, affine) ----
    x = x_ref[...].astype(jnp.float32)                        # (Bt, T, C)
    mu = jnp.mean(x, axis=-1, keepdims=True)
    xc = x - mu
    var = jnp.mean(xc * xc, axis=-1, keepdims=True)
    xn = xc * lax.rsqrt(var + eps)
    xn = xn * lnw_ref[0] + lnb_ref[0]                         # (Bt, T, C) f32
    xn2 = xn.reshape(M, C).astype(jnp.bfloat16)

    # ---- Q/K/V projections: three (M,C)@(C,C) bf16 MXU matmuls.
    #      Weights are pre-cast bf16; the attention scale is pre-folded into
    #      wq / bq, so no in-kernel scaling is needed.
    q = (jnp.dot(xn2, wq_ref[...], preferred_element_type=jnp.float32)
         + bq_ref[0]).astype(jnp.bfloat16).reshape(Bt, T, C)
    k = (jnp.dot(xn2, wk_ref[...], preferred_element_type=jnp.float32)
         + bk_ref[0]).astype(jnp.bfloat16).reshape(Bt, T, C)
    v = (jnp.dot(xn2, wv_ref[...], preferred_element_type=jnp.float32)
         + bv_ref[0]).astype(jnp.bfloat16).reshape(Bt, T, C)

    # ---- per-head attention (batched over Bt); head outputs staged into a
    #      bf16 VMEM scratch so the output projection runs once with K = C.
    for h in range(num_heads):
        sl = slice(h * head_dim, (h + 1) * head_dim)
        qh, kh, vh = q[:, :, sl], k[:, :, sl], v[:, :, sl]     # (Bt, T, hd) bf16
        # s[b, n, m] = sum_d q[b, n, d] * k[b, m, d]
        s = lax.dot_general(qh, kh, (((2,), (2,)), ((0,), (0,))),
                            preferred_element_type=jnp.float32)        # (Bt,T,T)
        s_max = jnp.max(s, axis=-1, keepdims=True)
        p = jnp.exp(s - s_max)
        p = p * pl.reciprocal(jnp.sum(p, axis=-1, keepdims=True), approx=True)
        oh = lax.dot_general(p.astype(jnp.bfloat16), vh,
                             (((2,), (1,)), ((0,), (0,))),
                             preferred_element_type=jnp.float32)       # (Bt,T,hd)
        o_scratch[:, sl] = oh.reshape(M, head_dim).astype(jnp.bfloat16)

    # ---- single full-K output projection (M,C)@(C,C) ----
    proj = jnp.dot(o_scratch[...], projw_ref[...],
                   preferred_element_type=jnp.float32) + projb_ref[0]  # (M, C)

    # ---- temporal_fc (Linear C -> C) ----
    tfc = jnp.dot(proj.astype(jnp.bfloat16), tfcw_ref[...],
                  preferred_element_type=jnp.float32) + tfcb_ref[0]    # (M, C)

    # ---- residual on the un-normalized input (re-read the ref; do not keep
    #      the f32 copy live across the whole body) ----
    out_ref[...] = (x_ref[...].astype(jnp.float32)
                    + tfc.reshape(Bt, T, C)).astype(out_ref.dtype)


def _vmem_budget_bytes():
    """Generation-aware scoped-VMEM budget (~70% of physical per core)."""
    try:
        cap = int(pltpu.get_tpu_info().vmem_capacity_bytes)
    except Exception:
        cap = 64 * 1024 * 1024          # conservative fallback (v7x physical)
    return max(32 * 1024 * 1024, int(cap * 0.70))


def _weight_vmem_bytes(C):
    # 5 bf16 (C,C) weight mats (q,k,v,proj,temporal_fc) + small f32 biases/LN;
    # x2 in case the constant-index blocks are double-buffered by the runtime.
    return 2 * (5 * C * C * 2 + 8 * C * 4)


def _block_act_bytes(Bt, T, C):
    lane = 128
    pad_c = -(-C // lane) * lane
    pad_t = -(-T // lane) * lane
    rows = Bt * T
    return (4 * rows * pad_c * 4            # double-buffered in + out blocks (f32)
            + 2 * rows * pad_c * 4          # x f32 + LN output f32
            + rows * pad_c * 2              # LN output bf16
            + 3 * rows * pad_c * (4 + 2)    # q/k/v f32 results + bf16 copies
            + 4 * Bt * max(T, 8) * pad_t * 4  # per-head scores/probs (lane-padded)
            + rows * pad_c * 2              # staged head outputs (bf16 scratch)
            + 2 * rows * pad_c * 4)         # proj + temporal_fc f32 results


def _choose_block_batch(BP, T, C, budget_bytes, target_rows=1024, min_steps=2):
    """Largest Bt | BP whose working set (weights + activations) fits the
    budget, with >= min_steps grid steps (even counts preferred for the two
    v7x TensorCores) and Bt*T capped around target_rows."""
    wbytes = _weight_vmem_bytes(C)
    best, best_even = 1, None
    for d in range(1, BP + 1):
        if BP % d:
            continue
        steps = BP // d
        if BP >= min_steps and steps < min_steps:
            break
        if wbytes + _block_act_bytes(d, T, C) > budget_bytes:
            break
        best = d
        if steps % 2 == 0:
            best_even = d
        if d * T >= target_rows:
            break
    if best_even is not None and 2 * best_even >= best:
        return best_even
    return best


def divided_temporal_attention_prenorm(query, ln_w, ln_b, qkv_w, qkv_b,
                                       proj_w, proj_b, tfc_w, tfc_b, *,
                                       num_heads, num_frames, eps=1e-5,
                                       block_batch=None):
    B, n_tot, C = query.shape
    T = num_frames
    assert (n_tot - 1) % T == 0, "query must be (B, 1 + P*num_frames, C)"
    assert C % num_heads == 0, "embed_dims must be divisible by num_heads"
    P = (n_tot - 1) // T
    head_dim = C // num_heads
    scale = head_dim ** (-0.5)

    cls_tok = query[:, :1, :]                      # (B, 1, C)
    body = query[:, 1:, :]                         # (B, P*T, C) -- residual
    x_t = body.reshape(B * P, T, C)                # 'b (p t) d -> (b p) t d'
    BP = B * P

    budget = _vmem_budget_bytes()
    Bt = block_batch if block_batch is not None else _choose_block_batch(
        BP, T, C, budget)
    assert BP % Bt == 0, "block_batch must divide B * num_patches"

    # ---- one-time weight prep (wrapper-side): split fused qkv, fold the
    #      attention scale into the Q weight/bias, pre-cast big mats to bf16.
    f32 = jnp.float32
    w_q = (qkv_w[:, :C] * scale).astype(jnp.bfloat16)
    w_k = qkv_w[:, C:2 * C].astype(jnp.bfloat16)
    w_v = qkv_w[:, 2 * C:].astype(jnp.bfloat16)
    b_q = (qkv_b[:C] * scale).reshape(1, C).astype(f32)
    b_k = qkv_b[C:2 * C].reshape(1, C).astype(f32)
    b_v = qkv_b[2 * C:].reshape(1, C).astype(f32)
    proj_wb = proj_w.astype(jnp.bfloat16)
    tfc_wb = tfc_w.astype(jnp.bfloat16)

    kernel = functools.partial(_divided_temporal_attn_kernel,
                               num_heads=num_heads, head_dim=head_dim, eps=eps)

    const2d = lambda shape: pl.BlockSpec(shape, lambda i: (0, 0))

    M_total = BP * T
    cost = pl.CostEstimate(
        flops=2 * M_total * C * (5 * C + 2 * T),
        transcendentals=BP * num_heads * T * T + M_total,
        bytes_accessed=2 * M_total * C * 4 + 5 * C * C * 2 + 8 * C * 4,
    )

    out_t = pl.pallas_call(
        kernel,
        out_shape=jax.ShapeDtypeStruct((BP, T, C), query.dtype),
        grid_spec=pltpu.PrefetchScalarGridSpec(
            num_scalar_prefetch=0,
            grid=(BP // Bt,),
            in_specs=[
                pl.BlockSpec((Bt, T, C), lambda i: (i, 0, 0)),   # x (temporal view)
                const2d((1, C)),                                  # ln_w
                const2d((1, C)),                                  # ln_b
                const2d((C, C)),                                  # w_q (scaled, bf16)
                const2d((1, C)),                                  # b_q (scaled)
                const2d((C, C)),                                  # w_k
                const2d((1, C)),                                  # b_k
                const2d((C, C)),                                  # w_v
                const2d((1, C)),                                  # b_v
                const2d((C, C)),                                  # proj_w (bf16)
                const2d((1, C)),                                  # proj_b
                const2d((C, C)),                                  # temporal_fc w (bf16)
                const2d((1, C)),                                  # temporal_fc b
            ],
            out_specs=pl.BlockSpec((Bt, T, C), lambda i: (i, 0, 0)),
            scratch_shapes=[pltpu.VMEM((Bt * T, C), jnp.bfloat16)],
        ),
        compiler_params=pltpu.CompilerParams(
            dimension_semantics=("parallel",),
            vmem_limit_bytes=budget),
        cost_estimate=cost,
    )(x_t,
      ln_w.reshape(1, C).astype(f32), ln_b.reshape(1, C).astype(f32),
      w_q, b_q, w_k, b_k, w_v, b_v,
      proj_wb, proj_b.reshape(1, C).astype(f32),
      tfc_wb, tfc_b.reshape(1, C).astype(f32))

    out_body = out_t.reshape(B, P * T, C)          # '(b p) t d -> b (p t) d'
    return jnp.concatenate([cls_tok, out_body], axis=1)


def _reference(query, ln_w, ln_b, qkv_w, qkv_b, proj_w, proj_b, tfc_w, tfc_b,
               num_heads, num_frames, eps=1e-5):
    """Pure-JAX mirror of the PyTorch forward (eval mode, use_cls_token=False)."""
    B, n_tot, C = query.shape
    T = num_frames
    P = (n_tot - 1) // T
    hd = C // num_heads
    scale = hd ** (-0.5)

    cls_tok = query[:, :1, :]
    body = query[:, 1:, :]
    x = body.reshape(B * P, T, C)

    mu = jnp.mean(x, -1, keepdims=True)
    var = jnp.mean((x - mu) ** 2, -1, keepdims=True)
    xn = (x - mu) / jnp.sqrt(var + eps) * ln_w + ln_b

    qkv = xn @ qkv_w + qkv_b                                   # (BP, T, 3C)
    qkv = qkv.reshape(B * P, T, 3, num_heads, hd).transpose(2, 0, 3, 1, 4)
    q, k, v = qkv[0], qkv[1], qkv[2]                           # (BP, H, T, hd)
    attn = jax.nn.softmax((q @ jnp.swapaxes(k, -2, -1)) * scale, axis=-1)
    o = (attn @ v).transpose(0, 2, 1, 3).reshape(B * P, T, C)
    o = o @ proj_w + proj_b
    o = o @ tfc_w + tfc_b                                      # temporal_fc
    out_body = body + o.reshape(B, P * T, C)
    return jnp.concatenate([cls_tok, out_body], axis=1)


if __name__ == "__main__":
    key = jax.random.PRNGKey(0)
    # embed_dims=32, num_heads=4, num_frames=8, num_patches=4, batch=2
    B, C, H, T, P = 2, 32, 4, 8, 4
    n_tot = 1 + P * T

    ks = jax.random.split(key, 8)
    query = jax.random.normal(ks[0], (B, n_tot, C), jnp.float32)
    ln_w = jnp.ones((C,), jnp.float32) + 0.1 * jax.random.normal(ks[1], (C,), jnp.float32)
    ln_b = 0.1 * jax.random.normal(ks[2], (C,), jnp.float32)
    qkv_w = 0.05 * jax.random.normal(ks[3], (C, 3 * C), jnp.float32)
    qkv_b = 0.02 * jax.random.normal(ks[4], (3 * C,), jnp.float32)
    proj_w = 0.05 * jax.random.normal(ks[5], (C, C), jnp.float32)
    proj_b = 0.02 * jax.random.normal(ks[6], (C,), jnp.float32)
    # temporal_fc is zero-initialized in the PyTorch module; use small random
    # weights here so the full compute path is exercised by the check.
    tfc_w = 0.05 * jax.random.normal(ks[7], (C, C), jnp.float32)
    tfc_b = jnp.zeros((C,), jnp.float32)

    ref = _reference(query, ln_w, ln_b, qkv_w, qkv_b, proj_w, proj_b,
                     tfc_w, tfc_b, H, T)

    # 1) auto block size (VMEM-budget aware; guarantees >= 2 grid steps here)
    out = divided_temporal_attention_prenorm(
        query, ln_w, ln_b, qkv_w, qkv_b, proj_w, proj_b, tfc_w, tfc_b,
        num_heads=H, num_frames=T)
    out = jax.block_until_ready(out)
    assert out.shape == (B, n_tot, C)
    # bf16 matmul operands (f32 accumulation) => looser tolerance than pure f32
    assert jnp.allclose(out, ref, atol=2e-2, rtol=2e-2), (
        f"max err {jnp.max(jnp.abs(out - ref))}")

    # 2) multi-step grid (Bt=2 -> 4 pipelined steps) to exercise the tiling path
    out2 = divided_temporal_attention_prenorm(
        query, ln_w, ln_b, qkv_w, qkv_b, proj_w, proj_b, tfc_w, tfc_b,
        num_heads=H, num_frames=T, block_batch=2)
    out2 = jax.block_until_ready(out2)
    assert jnp.allclose(out2, ref, atol=2e-2, rtol=2e-2), (
        f"max err {jnp.max(jnp.abs(out2 - ref))}")

    print("KERNEL_OK")
</pallas_src>

<mosaic_0001>
module attributes {stable_mosaic.version = 11 : i64} {
  func.func @_divided_temporal_attn_kernel(%arg0: i32, %arg1: memref<4x8x32xf32, #tpu.memory_space<vmem>>, %arg2: memref<1x32xf32, #tpu.memory_space<vmem>>, %arg3: memref<1x32xf32, #tpu.memory_space<vmem>>, %arg4: memref<32x32xbf16, #tpu.memory_space<vmem>>, %arg5: memref<1x32xf32, #tpu.memory_space<vmem>>, %arg6: memref<32x32xbf16, #tpu.memory_space<vmem>>, %arg7: memref<1x32xf32, #tpu.memory_space<vmem>>, %arg8: memref<32x32xbf16, #tpu.memory_space<vmem>>, %arg9: memref<1x32xf32, #tpu.memory_space<vmem>>, %arg10: memref<32x32xbf16, #tpu.memory_space<vmem>>, %arg11: memref<1x32xf32, #tpu.memory_space<vmem>>, %arg12: memref<32x32xbf16, #tpu.memory_space<vmem>>, %arg13: memref<1x32xf32, #tpu.memory_space<vmem>>, %arg14: memref<4x8x32xf32, #tpu.memory_space<vmem>>, %arg15: memref<32x32xbf16, #tpu.memory_space<vmem>>) attributes {dimension_semantics = [#tpu.dimension_semantics<parallel>], iteration_bounds = array<i64: 2>, scalar_prefetch = 0 : i64, scratch_operands = 1 : i64, tpu.core_type = #tpu.core_type<tc>, window_params = [{transform_indices = @transform_0, window_bounds = array<i64: 4, 8, 32>}, {pipeline_mode = #tpu.pipeline_mode<synchronous>, transform_indices = @transform_1, window_bounds = array<i64: 1, 32>}, {pipeline_mode = #tpu.pipeline_mode<synchronous>, transform_indices = @transform_2, window_bounds = array<i64: 1, 32>}, {pipeline_mode = #tpu.pipeline_mode<synchronous>, transform_indices = @transform_3, window_bounds = array<i64: 32, 32>}, {pipeline_mode = #tpu.pipeline_mode<synchronous>, transform_indices = @transform_4, window_bounds = array<i64: 1, 32>}, {pipeline_mode = #tpu.pipeline_mode<synchronous>, transform_indices = @transform_5, window_bounds = array<i64: 32, 32>}, {pipeline_mode = #tpu.pipeline_mode<synchronous>, transform_indices = @transform_6, window_bounds = array<i64: 1, 32>}, {pipeline_mode = #tpu.pipeline_mode<synchronous>, transform_indices = @transform_7, window_bounds = array<i64: 32, 32>}, {pipeline_mode = #tpu.pipeline_mode<synchronous>, transform_indices = @transform_8, window_bounds = array<i64: 1, 32>}, {pipeline_mode = #tpu.pipeline_mode<synchronous>, transform_indices = @transform_9, window_bounds = array<i64: 32, 32>}, {pipeline_mode = #tpu.pipeline_mode<synchronous>, transform_indices = @transform_10, window_bounds = array<i64: 1, 32>}, {pipeline_mode = #tpu.pipeline_mode<synchronous>, transform_indices = @transform_11, window_bounds = array<i64: 32, 32>}, {pipeline_mode = #tpu.pipeline_mode<synchronous>, transform_indices = @transform_12, window_bounds = array<i64: 1, 32>}, {transform_indices = @transform_13, window_bounds = array<i64: 4, 8, 32>}]} {
    %c0 = arith.constant 0 : index
    %c0_0 = arith.constant 0 : index
    %c0_1 = arith.constant 0 : index
    %0 = vector.load %arg1[%c0, %c0_0, %c0_1] : memref<4x8x32xf32, #tpu.memory_space<vmem>>, vector<4x8x32xf32>
    %cst = arith.constant dense<0.000000e+00> : vector<4x8xf32>
    %1 = vector.multi_reduction <add>, %0, %cst [2] : vector<4x8x32xf32> to vector<4x8xf32>
    %2 = vector.shape_cast %1 : vector<4x8xf32> to vector<4x8x1xf32>
    %cst_2 = arith.constant 3.200000e+01 : f32
    %3 = vector.broadcast %cst_2 : f32 to vector<4x8x1xf32>
    %4 = arith.divf %2, %3 : vector<4x8x1xf32>
    %5 = vector.broadcast %4 : vector<4x8x1xf32> to vector<4x8x32xf32>
    %6 = arith.subf %0, %5 : vector<4x8x32xf32>
    %7 = arith.mulf %6, %6 : vector<4x8x32xf32>
    %cst_3 = arith.constant dense<0.000000e+00> : vector<4x8xf32>
    %8 = vector.multi_reduction <add>, %7, %cst_3 [2] : vector<4x8x32xf32> to vector<4x8xf32>
    %9 = vector.shape_cast %8 : vector<4x8xf32> to vector<4x8x1xf32>
    %cst_4 = arith.constant 3.200000e+01 : f32
    %10 = vector.broadcast %cst_4 : f32 to vector<4x8x1xf32>
    %11 = arith.divf %9, %10 : vector<4x8x1xf32>
    %cst_5 = arith.constant 9.99999974E-6 : f32
    %12 = vector.broadcast %cst_5 : f32 to vector<4x8x1xf32>
    %13 = arith.addf %11, %12 : vector<4x8x1xf32>
    %14 = math.rsqrt %13 : vector<4x8x1xf32>
    %15 = vector.broadcast %14 : vector<4x8x1xf32> to vector<4x8x32xf32>
    %16 = arith.mulf %6, %15 : vector<4x8x32xf32>
    %c0_6 = arith.constant 0 : index
    %c0_7 = arith.constant 0 : index
    %17 = vector.load %arg2[%c0_6, %c0_7] : memref<1x32xf32, #tpu.memory_space<vmem>>, vector<1x32xf32>
    %18 = vector.shape_cast %17 : vector<1x32xf32> to vector<32xf32>
    %19 = vector.shape_cast %18 : vector<32xf32> to vector<1x1x32xf32>
    %20 = vector.broadcast %19 : vector<1x1x32xf32> to vector<4x8x32xf32>
    %21 = arith.mulf %16, %20 : vector<4x8x32xf32>
    %c0_8 = arith.constant 0 : index
    %c0_9 = arith.constant 0 : index
    %22 = vector.load %arg3[%c0_8, %c0_9] : memref<1x32xf32, #tpu.memory_space<vmem>>, vector<1x32xf32>
    %23 = vector.shape_cast %22 : vector<1x32xf32> to vector<32xf32>
    %24 = vector.shape_cast %23 : vector<32xf32> to vector<1x1x32xf32>
    %25 = vector.broadcast %24 : vector<1x1x32xf32> to vector<4x8x32xf32>
    %26 = arith.addf %21, %25 : vector<4x8x32xf32>
    %27 = vector.shape_cast %26 : vector<4x8x32xf32> to vector<32x32xf32>
    %28 = arith.truncf %27 : vector<32x32xf32> to vector<32x32xbf16>
    %c0_10 = arith.constant 0 : index
    %c0_11 = arith.constant 0 : index
    %29 = vector.load %arg4[%c0_10, %c0_11] : memref<32x32xbf16, #tpu.memory_space<vmem>>, vector<32x32xbf16>
    %cst_12 = arith.constant dense<0.000000e+00> : vector<32x32xf32>
    %30 = tpu.matmul %28, %29, %cst_12 {dimension_numbers = #tpu.dot_dimension_numbers<[1], [0], [0], [1], [0, 0, 1, 1], [], []>} : vector<32x32xbf16>, vector<32x32xbf16>, vector<32x32xf32> -> vector<32x32xf32>
    %c0_13 = arith.constant 0 : index
    %c0_14 = arith.constant 0 : index
    %31 = vector.load %arg5[%c0_13, %c0_14] : memref<1x32xf32, #tpu.memory_space<vmem>>, vector<1x32xf32>
    %32 = vector.shape_cast %31 : vector<1x32xf32> to vector<32xf32>
    %33 = vector.shape_cast %32 : vector<32xf32> to vector<1x32xf32>
    %34 = vector.broadcast %33 : vector<1x32xf32> to vector<32x32xf32>
    %35 = arith.addf %30, %34 : vector<32x32xf32>
    %36 = arith.truncf %35 : vector<32x32xf32> to vector<32x32xbf16>
    %37 = vector.shape_cast %36 : vector<32x32xbf16> to vector<4x8x32xbf16>
    %c0_15 = arith.constant 0 : index
    %c0_16 = arith.constant 0 : index
    %38 = vector.load %arg6[%c0_15, %c0_16] : memref<32x32xbf16, #tpu.memory_space<vmem>>, vector<32x32xbf16>
    %cst_17 = arith.constant dense<0.000000e+00> : vector<32x32xf32>
    %39 = tpu.matmul %28, %38, %cst_17 {dimension_numbers = #tpu.dot_dimension_numbers<[1], [0], [0], [1], [0, 0, 1, 1], [], []>} : vector<32x32xbf16>, vector<32x32xbf16>, vector<32x32xf32> -> vector<32x32xf32>
    %c0_18 = arith.constant 0 : index
    %c0_19 = arith.constant 0 : index
    %40 = vector.load %arg7[%c0_18, %c0_19] : memref<1x32xf32, #tpu.memory_space<vmem>>, vector<1x32xf32>
    %41 = vector.shape_cast %40 : vector<1x32xf32> to vector<32xf32>
    %42 = vector.shape_cast %41 : vector<32xf32> to vector<1x32xf32>
    %43 = vector.broadcast %42 : vector<1x32xf32> to vector<32x32xf32>
    %44 = arith.addf %39, %43 : vector<32x32xf32>
    %45 = arith.truncf %44 : vector<32x32xf32> to vector<32x32xbf16>
    %46 = vector.shape_cast %45 : vector<32x32xbf16> to vector<4x8x32xbf16>
    %c0_20 = arith.constant 0 : index
    %c0_21 = arith.constant 0 : index
    %47 = vector.load %arg8[%c0_20, %c0_21] : memref<32x32xbf16, #tpu.memory_space<vmem>>, vector<32x32xbf16>
    %cst_22 = arith.constant dense<0.000000e+00> : vector<32x32xf32>
    %48 = tpu.matmul %28, %47, %cst_22 {dimension_numbers = #tpu.dot_dimension_numbers<[1], [0], [0], [1], [0, 0, 1, 1], [], []>} : vector<32x32xbf16>, vector<32x32xbf16>, vector<32x32xf32> -> vector<32x32xf32>
    %c0_23 = arith.constant 0 : index
    %c0_24 = arith.constant 0 : index
    %49 = vector.load %arg9[%c0_23, %c0_24] : memref<1x32xf32, #tpu.memory_space<vmem>>, vector<1x32xf32>
    %50 = vector.shape_cast %49 : vector<1x32xf32> to vector<32xf32>
    %51 = vector.shape_cast %50 : vector<32xf32> to vector<1x32xf32>
    %52 = vector.broadcast %51 : vector<1x32xf32> to vector<32x32xf32>
    %53 = arith.addf %48, %52 : vector<32x32xf32>
    %54 = arith.truncf %53 : vector<32x32xf32> to vector<32x32xbf16>
    %55 = vector.shape_cast %54 : vector<32x32xbf16> to vector<4x8x32xbf16>
    %56 = vector.extract_strided_slice %37 {offsets = [0, 0, 0], sizes = [4, 8, 8], strides = [1, 1, 1]} : vector<4x8x32xbf16> to vector<4x8x8xbf16>
    %57 = vector.extract_strided_slice %46 {offsets = [0, 0, 0], sizes = [4, 8, 8], strides = [1, 1, 1]} : vector<4x8x32xbf16> to vector<4x8x8xbf16>
    %58 = vector.extract_strided_slice %55 {offsets = [0, 0, 0], sizes = [4, 8, 8], strides = [1, 1, 1]} : vector<4x8x32xbf16> to vector<4x8x8xbf16>
    %cst_25 = arith.constant dense<0.000000e+00> : vector<4x8x8xf32>
    %59 = tpu.matmul %56, %57, %cst_25 {dimension_numbers = #tpu.dot_dimension_numbers<[2], [2], [1], [1], [0, 0, 0, 1, 1, 1], [0], [0]>} : vector<4x8x8xbf16>, vector<4x8x8xbf16>, vector<4x8x8xf32> -> vector<4x8x8xf32>
    %cst_26 = arith.constant dense<0xFF800000> : vector<4x8xf32>
    %60 = vector.multi_reduction <maximumf>, %59, %cst_26 [2] : vector<4x8x8xf32> to vector<4x8xf32>
    %61 = vector.shape_cast %60 : vector<4x8xf32> to vector<4x8x1xf32>
    %62 = vector.broadcast %61 : vector<4x8x1xf32> to vector<4x8x8xf32>
    %63 = arith.subf %59, %62 : vector<4x8x8xf32>
    %64 = math.exp %63 : vector<4x8x8xf32>
    %cst_27 = arith.constant dense<0.000000e+00> : vector<4x8xf32>
    %65 = vector.multi_reduction <add>, %64, %cst_27 [2] : vector<4x8x8xf32> to vector<4x8xf32>
    %66 = vector.shape_cast %65 : vector<4x8xf32> to vector<4x8x1xf32>
    %67 = tpu.reciprocal %66 {approx = true} : vector<4x8x1xf32> -> vector<4x8x1xf32>
    %68 = vector.broadcast %67 : vector<4x8x1xf32> to vector<4x8x8xf32>
    %69 = arith.mulf %64, %68 : vector<4x8x8xf32>
    %70 = arith.truncf %69 : vector<4x8x8xf32> to vector<4x8x8xbf16>
    %cst_28 = arith.constant dense<0.000000e+00> : vector<4x8x8xf32>
    %71 = tpu.matmul %70, %58, %cst_28 {dimension_numbers = #tpu.dot_dimension_numbers<[2], [1], [1], [2], [0, 0, 0, 1, 1, 2], [0], [0]>} : vector<4x8x8xbf16>, vector<4x8x8xbf16>, vector<4x8x8xf32> -> vector<4x8x8xf32>
    %72 = vector.shape_cast %71 : vector<4x8x8xf32> to vector<32x8xf32>
    %73 = arith.truncf %72 : vector<32x8xf32> to vector<32x8xbf16>
    %c0_29 = arith.constant 0 : index
    %c0_30 = arith.constant 0 : index
    %74 = vector.load %arg15[%c0_29, %c0_30] : memref<32x32xbf16, #tpu.memory_space<vmem>>, vector<32x8xbf16>
    tpu.vector_store %arg15[%c0_29, %c0_30], %73 {strides = array<i32>} : memref<32x32xbf16, #tpu.memory_space<vmem>>, vector<32x8xbf16>,
    %75 = vector.extract_strided_slice %37 {offsets = [0, 0, 8], sizes = [4, 8, 8], strides = [1, 1, 1]} : vector<4x8x32xbf16> to vector<4x8x8xbf16>
    %76 = vector.extract_strided_slice %46 {offsets = [0, 0, 8], sizes = [4, 8, 8], strides = [1, 1, 1]} : vector<4x8x32xbf16> to vector<4x8x8xbf16>
    %77 = vector.extract_strided_slice %55 {offsets = [0, 0, 8], sizes = [4, 8, 8], strides = [1, 1, 1]} : vector<4x8x32xbf16> to vector<4x8x8xbf16>
    %cst_31 = arith.constant dense<0.000000e+00> : vector<4x8x8xf32>
    %78 = tpu.matmul %75, %76, %cst_31 {dimension_numbers = #tpu.dot_dimension_numbers<[2], [2], [1], [1], [0, 0, 0, 1, 1, 1], [0], [0]>} : vector<4x8x8xbf16>, vector<4x8x8xbf16>, vector<4x8x8xf32> -> vector<4x8x8xf32>
    %cst_32 = arith.constant dense<0xFF800000> : vector<4x8xf32>
    %79 = vector.multi_reduction <maximumf>, %78, %cst_32 [2] : vector<4x8x8xf32> to vector<4x8xf32>
    %80 = vector.shape_cast %79 : vector<4x8xf32> to vector<4x8x1xf32>
    %81 = vector.broadcast %80 : vector<4x8x1xf32> to vector<4x8x8xf32>
    %82 = arith.subf %78, %81 : vector<4x8x8xf32>
    %83 = math.exp %82 : vector<4x8x8xf32>
    %cst_33 = arith.constant dense<0.000000e+00> : vector<4x8xf32>
    %84 = vector.multi_reduction <add>, %83, %cst_33 [2] : vector<4x8x8xf32> to vector<4x8xf32>
    %85 = vector.shape_cast %84 : vector<4x8xf32> to vector<4x8x1xf32>
    %86 = tpu.reciprocal %85 {approx = true} : vector<4x8x1xf32> -> vector<4x8x1xf32>
    %87 = vector.broadcast %86 : vector<4x8x1xf32> to vector<4x8x8xf32>
    %88 = arith.mulf %83, %87 : vector<4x8x8xf32>
    %89 = arith.truncf %88 : vector<4x8x8xf32> to vector<4x8x8xbf16>
    %cst_34 = arith.constant dense<0.000000e+00> : vector<4x8x8xf32>
    %90 = tpu.matmul %89, %77, %cst_34 {dimension_numbers = #tpu.dot_dimension_numbers<[2], [1], [1], [2], [0, 0, 0, 1, 1, 2], [0], [0]>} : vector<4x8x8xbf16>, vector<4x8x8xbf16>, vector<4x8x8xf32> -> vector<4x8x8xf32>
    %91 = vector.shape_cast %90 : vector<4x8x8xf32> to vector<32x8xf32>
    %92 = arith.truncf %91 : vector<32x8xf32> to vector<32x8xbf16>
    %c0_35 = arith.constant 0 : index
    %c8 = arith.constant 8 : index
    %93 = vector.load %arg15[%c0_35, %c8] : memref<32x32xbf16, #tpu.memory_space<vmem>>, vector<32x8xbf16>
    tpu.vector_store %arg15[%c0_35, %c8], %92 {strides = array<i32>} : memref<32x32xbf16, #tpu.memory_space<vmem>>, vector<32x8xbf16>,
    %94 = vector.extract_strided_slice %37 {offsets = [0, 0, 16], sizes = [4, 8, 8], strides = [1, 1, 1]} : vector<4x8x32xbf16> to vector<4x8x8xbf16>
    %95 = vector.extract_strided_slice %46 {offsets = [0, 0, 16], sizes = [4, 8, 8], strides = [1, 1, 1]} : vector<4x8x32xbf16> to vector<4x8x8xbf16>
    %96 = vector.extract_strided_slice %55 {offsets = [0, 0, 16], sizes = [4, 8, 8], strides = [1, 1, 1]} : vector<4x8x32xbf16> to vector<4x8x8xbf16>
    %cst_36 = arith.constant dense<0.000000e+00> : vector<4x8x8xf32>
    %97 = tpu.matmul %94, %95, %cst_36 {dimension_numbers = #tpu.dot_dimension_numbers<[2], [2], [1], [1], [0, 0, 0, 1, 1, 1], [0], [0]>} : vector<4x8x8xbf16>, vector<4x8x8xbf16>, vector<4x8x8xf32> -> vector<4x8x8xf32>
    %cst_37 = arith.constant dense<0xFF800000> : vector<4x8xf32>
    %98 = vector.multi_reduction <maximumf>, %97, %cst_37 [2] : vector<4x8x8xf32> to vector<4x8xf32>
    %99 = vector.shape_cast %98 : vector<4x8xf32> to vector<4x8x1xf32>
    %100 = vector.broadcast %99 : vector<4x8x1xf32> to vector<4x8x8xf32>
    %101 = arith.subf %97, %100 : vector<4x8x8xf32>
    %102 = math.exp %101 : vector<4x8x8xf32>
    %cst_38 = arith.constant dense<0.000000e+00> : vector<4x8xf32>
    %103 = vector.multi_reduction <add>, %102, %cst_38 [2] : vector<4x8x8xf32> to vector<4x8xf32>
    %104 = vector.shape_cast %103 : vector<4x8xf32> to vector<4x8x1xf32>
    %105 = tpu.reciprocal %104 {approx = true} : vector<4x8x1xf32> -> vector<4x8x1xf32>
    %106 = vector.broadcast %105 : vector<4x8x1xf32> to vector<4x8x8xf32>
    %107 = arith.mulf %102, %106 : vector<4x8x8xf32>
    %108 = arith.truncf %107 : vector<4x8x8xf32> to vector<4x8x8xbf16>
    %cst_39 = arith.constant dense<0.000000e+00> : vector<4x8x8xf32>
    %109 = tpu.matmul %108, %96, %cst_39 {dimension_numbers = #tpu.dot_dimension_numbers<[2], [1], [1], [2], [0, 0, 0, 1, 1, 2], [0], [0]>} : vector<4x8x8xbf16>, vector<4x8x8xbf16>, vector<4x8x8xf32> -> vector<4x8x8xf32>
    %110 = vector.shape_cast %109 : vector<4x8x8xf32> to vector<32x8xf32>
    %111 = arith.truncf %110 : vector<32x8xf32> to vector<32x8xbf16>
    %c0_40 = arith.constant 0 : index
    %c16 = arith.constant 16 : index
    %112 = vector.load %arg15[%c0_40, %c16] : memref<32x32xbf16, #tpu.memory_space<vmem>>, vector<32x8xbf16>
    tpu.vector_store %arg15[%c0_40, %c16], %111 {strides = array<i32>} : memref<32x32xbf16, #tpu.memory_space<vmem>>, vector<32x8xbf16>,
    %113 = vector.extract_strided_slice %37 {offsets = [0, 0, 24], sizes = [4, 8, 8], strides = [1, 1, 1]} : vector<4x8x32xbf16> to vector<4x8x8xbf16>
    %114 = vector.extract_strided_slice %46 {offsets = [0, 0, 24], sizes = [4, 8, 8], strides = [1, 1, 1]} : vector<4x8x32xbf16> to vector<4x8x8xbf16>
    %115 = vector.extract_strided_slice %55 {offsets = [0, 0, 24], sizes = [4, 8, 8], strides = [1, 1, 1]} : vector<4x8x32xbf16> to vector<4x8x8xbf16>
    %cst_41 = arith.constant dense<0.000000e+00> : vector<4x8x8xf32>
    %116 = tpu.matmul %113, %114, %cst_41 {dimension_numbers = #tpu.dot_dimension_numbers<[2], [2], [1], [1], [0, 0, 0, 1, 1, 1], [0], [0]>} : vector<4x8x8xbf16>, vector<4x8x8xbf16>, vector<4x8x8xf32> -> vector<4x8x8xf32>
    %cst_42 = arith.constant dense<0xFF800000> : vector<4x8xf32>
    %117 = vector.multi_reduction <maximumf>, %116, %cst_42 [2] : vector<4x8x8xf32> to vector<4x8xf32>
    %118 = vector.shape_cast %117 : vector<4x8xf32> to vector<4x8x1xf32>
    %119 = vector.broadcast %118 : vector<4x8x1xf32> to vector<4x8x8xf32>
    %120 = arith.subf %116, %119 : vector<4x8x8xf32>
    %121 = math.exp %120 : vector<4x8x8xf32>
    %cst_43 = arith.constant dense<0.000000e+00> : vector<4x8xf32>
    %122 = vector.multi_reduction <add>, %121, %cst_43 [2] : vector<4x8x8xf32> to vector<4x8xf32>
    %123 = vector.shape_cast %122 : vector<4x8xf32> to vector<4x8x1xf32>
    %124 = tpu.reciprocal %123 {approx = true} : vector<4x8x1xf32> -> vector<4x8x1xf32>
    %125 = vector.broadcast %124 : vector<4x8x1xf32> to vector<4x8x8xf32>
    %126 = arith.mulf %121, %125 : vector<4x8x8xf32>
    %127 = arith.truncf %126 : vector<4x8x8xf32> to vector<4x8x8xbf16>
    %cst_44 = arith.constant dense<0.000000e+00> : vector<4x8x8xf32>
    %128 = tpu.matmul %127, %115, %cst_44 {dimension_numbers = #tpu.dot_dimension_numbers<[2], [1], [1], [2], [0, 0, 0, 1, 1, 2], [0], [0]>} : vector<4x8x8xbf16>, vector<4x8x8xbf16>, vector<4x8x8xf32> -> vector<4x8x8xf32>
    %129 = vector.shape_cast %128 : vector<4x8x8xf32> to vector<32x8xf32>
    %130 = arith.truncf %129 : vector<32x8xf32> to vector<32x8xbf16>
    %c0_45 = arith.constant 0 : index
    %c24 = arith.constant 24 : index
    %131 = vector.load %arg15[%c0_45, %c24] : memref<32x32xbf16, #tpu.memory_space<vmem>>, vector<32x8xbf16>
    tpu.vector_store %arg15[%c0_45, %c24], %130 {strides = array<i32>} : memref<32x32xbf16, #tpu.memory_space<vmem>>, vector<32x8xbf16>,
    %c0_46 = arith.constant 0 : index
    %c0_47 = arith.constant 0 : index
    %132 = vector.load %arg15[%c0_46, %c0_47] : memref<32x32xbf16, #tpu.memory_space<vmem>>, vector<32x32xbf16>
    %c0_48 = arith.constant 0 : index
    %c0_49 = arith.constant 0 : index
    %133 = vector.load %arg10[%c0_48, %c0_49] : memref<32x32xbf16, #tpu.memory_space<vmem>>, vector<32x32xbf16>
    %cst_50 = arith.constant dense<0.000000e+00> : vector<32x32xf32>
    %134 = tpu.matmul %132, %133, %cst_50 {dimension_numbers = #tpu.dot_dimension_numbers<[1], [0], [0], [1], [0, 0, 1, 1], [], []>} : vector<32x32xbf16>, vector<32x32xbf16>, vector<32x32xf32> -> vector<32x32xf32>
    %c0_51 = arith.constant 0 : index
    %c0_52 = arith.constant 0 : index
    %135 = vector.load %arg11[%c0_51, %c0_52] : memref<1x32xf32, #tpu.memory_space<vmem>>, vector<1x32xf32>
    %136 = vector.shape_cast %135 : vector<1x32xf32> to vector<32xf32>
    %137 = vector.shape_cast %136 : vector<32xf32> to vector<1x32xf32>
    %138 = vector.broadcast %137 : vector<1x32xf32> to vector<32x32xf32>
    %139 = arith.addf %134, %138 : vector<32x32xf32>
    %140 = arith.truncf %139 : vector<32x32xf32> to vector<32x32xbf16>
    %c0_53 = arith.constant 0 : index
    %c0_54 = arith.constant 0 : index
    %141 = vector.load %arg12[%c0_53, %c0_54] : memref<32x32xbf16, #tpu.memory_space<vmem>>, vector<32x32xbf16>
    %cst_55 = arith.constant dense<0.000000e+00> : vector<32x32xf32>
    %142 = tpu.matmul %140, %141, %cst_55 {dimension_numbers = #tpu.dot_dimension_numbers<[1], [0], [0], [1], [0, 0, 1, 1], [], []>} : vector<32x32xbf16>, vector<32x32xbf16>, vector<32x32xf32> -> vector<32x32xf32>
    %c0_56 = arith.constant 0 : index
    %c0_57 = arith.constant 0 : index
    %143 = vector.load %arg13[%c0_56, %c0_57] : memref<1x32xf32, #tpu.memory_space<vmem>>, vector<1x32xf32>
    %144 = vector.shape_cast %143 : vector<1x32xf32> to vector<32xf32>
    %145 = vector.shape_cast %144 : vector<32xf32> to vector<1x32xf32>
    %146 = vector.broadcast %145 : vector<1x32xf32> to vector<32x32xf32>
    %147 = arith.addf %142, %146 : vector<32x32xf32>
    %c0_58 = arith.constant 0 : index
    %c0_59 = arith.constant 0 : index
    %c0_60 = arith.constant 0 : index
    %148 = vector.load %arg1[%c0_58, %c0_59, %c0_60] : memref<4x8x32xf32, #tpu.memory_space<vmem>>, vector<4x8x32xf32>
    %149 = vector.shape_cast %147 : vector<32x32xf32> to vector<4x8x32xf32>
    %150 = arith.addf %148, %149 : vector<4x8x32xf32>
    %c0_61 = arith.constant 0 : index
    %c0_62 = arith.constant 0 : index
    %c0_63 = arith.constant 0 : index
    %151 = vector.load %arg14[%c0_61, %c0_62, %c0_63] : memref<4x8x32xf32, #tpu.memory_space<vmem>>, vector<4x8x32xf32>
    tpu.vector_store %arg14[%c0_61, %c0_62, %c0_63], %150 {strides = array<i32>} : memref<4x8x32xf32, #tpu.memory_space<vmem>>, vector<4x8x32xf32>,
    return
  }
  func.func @transform_0(%arg0: i32) -> (i32, i32, i32) {
    %c0_i32 = arith.constant 0 : i32
    %c0_i32_0 = arith.constant 0 : i32
    %c0_i32_1 = arith.constant 0 : i32
    return %arg0, %c0_i32, %c0_i32_0 : i32, i32, i32
  }
  func.func @transform_1(%arg0: i32) -> (i32, i32) {
    %c0_i32 = arith.constant 0 : i32
    %c0_i32_0 = arith.constant 0 : i32
    %c0_i32_1 = arith.constant 0 : i32
    return %c0_i32, %c0_i32_0 : i32, i32
  }
  func.func @transform_2(%arg0: i32) -> (i32, i32) {
    %c0_i32 = arith.constant 0 : i32
    %c0_i32_0 = arith.constant 0 : i32
    %c0_i32_1 = arith.constant 0 : i32
    return %c0_i32, %c0_i32_0 : i32, i32
  }
  func.func @transform_3(%arg0: i32) -> (i32, i32) {
    %c0_i32 = arith.constant 0 : i32
    %c0_i32_0 = arith.constant 0 : i32
    %c0_i32_1 = arith.constant 0 : i32
    return %c0_i32, %c0_i32_0 : i32, i32
  }
  func.func @transform_4(%arg0: i32) -> (i32, i32) {
    %c0_i32 = arith.constant 0 : i32
    %c0_i32_0 = arith.constant 0 : i32
    %c0_i32_1 = arith.constant 0 : i32
    return %c0_i32, %c0_i32_0 : i32, i32
  }
  func.func @transform_5(%arg0: i32) -> (i32, i32) {
    %c0_i32 = arith.constant 0 : i32
    %c0_i32_0 = arith.constant 0 : i32
    %c0_i32_1 = arith.constant 0 : i32
    return %c0_i32, %c0_i32_0 : i32, i32
  }
  func.func @transform_6(%arg0: i32) -> (i32, i32) {
    %c0_i32 = arith.constant 0 : i32
    %c0_i32_0 = arith.constant 0 : i32
    %c0_i32_1 = arith.constant 0 : i32
    return %c0_i32, %c0_i32_0 : i32, i32
  }
  func.func @transform_7(%arg0: i32) -> (i32, i32) {
    %c0_i32 = arith.constant 0 : i32
    %c0_i32_0 = arith.constant 0 : i32
    %c0_i32_1 = arith.constant 0 : i32
    return %c0_i32, %c0_i32_0 : i32, i32
  }
  func.func @transform_8(%arg0: i32) -> (i32, i32) {
    %c0_i32 = arith.constant 0 : i32
    %c0_i32_0 = arith.constant 0 : i32
    %c0_i32_1 = arith.constant 0 : i32
    return %c0_i32, %c0_i32_0 : i32, i32
  }
  func.func @transform_9(%arg0: i32) -> (i32, i32) {
    %c0_i32 = arith.constant 0 : i32
    %c0_i32_0 = arith.constant 0 : i32
    %c0_i32_1 = arith.constant 0 : i32
    return %c0_i32, %c0_i32_0 : i32, i32
  }
  func.func @transform_10(%arg0: i32) -> (i32, i32) {
    %c0_i32 = arith.constant 0 : i32
    %c0_i32_0 = arith.constant 0 : i32
    %c0_i32_1 = arith.constant 0 : i32
    return %c0_i32, %c0_i32_0 : i32, i32
  }
  func.func @transform_11(%arg0: i32) -> (i32, i32) {
    %c0_i32 = arith.constant 0 : i32
    %c0_i32_0 = arith.constant 0 : i32
    %c0_i32_1 = arith.constant 0 : i32
    return %c0_i32, %c0_i32_0 : i32, i32
  }
  func.func @transform_12(%arg0: i32) -> (i32, i32) {
    %c0_i32 = arith.constant 0 : i32
    %c0_i32_0 = arith.constant 0 : i32
    %c0_i32_1 = arith.constant 0 : i32
    return %c0_i32, %c0_i32_0 : i32, i32
  }
  func.func @transform_13(%arg0: i32) -> (i32, i32, i32) {
    %c0_i32 = arith.constant 0 : i32
    %c0_i32_0 = arith.constant 0 : i32
    %c0_i32_1 = arith.constant 0 : i32
    return %arg0, %c0_i32, %c0_i32_0 : i32, i32, i32
  }
}

</mosaic_0001>

<bundles_post_ra>
// kernel: tpu_custom_call.1
= control target key start
LH: loop header
LB: loop body
LE: loop exit
PB: predicated region body
PF: predicated region fallthrough
CT: control target
= control target key end

     0   :  { %s4715_s0 = inlined_call_operand.hbm [shape: f32[8,8,32], index: 0, kind: input, shape index: {}]   ;;  %s4716_s1 = inlined_call_operand.vmem [shape: f32[1,32], index: 1, kind: input, shape index: {}]   ;;  %s4717_s2 = inlined_call_operand.vmem [shape: f32[1,32], index: 2, kind: input, shape index: {}]   ;;  %s4718_s3 = inlined_call_operand.hbm [shape: bf16[32,32], index: 3, kind: input, shape index: {}]   ;;  %s4719_s4 = inlined_call_operand.hbm [shape: f32[1,32], index: 4, kind: input, shape index: {}]   ;;  %s4720_s5 = inlined_call_operand.vmem [shape: bf16[32,32], index: 5, kind: input, shape index: {}]   ;;  %s4721_s6 = inlined_call_operand.hbm [shape: f32[1,32], index: 6, kind: input, shape index: {}]   ;;  %s4722_s7 = inlined_call_operand.hbm [shape: bf16[32,32], index: 7, kind: input, shape index: {}]   ;;  %s4723_s8 = inlined_call_operand.hbm [shape: f32[1,32], index: 8, kind: input, shape index: {}]   ;;  %s4724_s9 = inlined_call_operand.vmem [shape: bf16[32,32], index: 9, kind: input, shape index: {}]   ;;  %s4725_s10 = inlined_call_operand.vmem [shape: f32[1,32], index: 10, kind: input, shape index: {}]   ;;  %s4726_s11 = inlined_call_operand.hbm [shape: bf16[32,32], index: 11, kind: input, shape index: {}]   ;;  %s4727_s12 = inlined_call_operand.vmem [shape: f32[1,32], index: 12, kind: input, shape index: {}]   ;;  %s4728_s13 = inlined_call_operand.hbm [shape: f32[8,8,32], index: 13, kind: output, shape index: {}]  }
   0x1   :  { %4737 = sst [smem:[#allocation21_spill]] %s4717_s2 }
   0x2   :  { %4738 = sst [smem:[#allocation22_spill]] %s4724_s9 }
   0x3   :  { %4739 = sst [smem:[#allocation23_spill]] %s4725_s10 }
   0x4   :  { %4740 = sst [smem:[#allocation24_spill]] %s4727_s12 }
   0x5   :  { %4741 = sst [smem:[#allocation25_spill]] %s4728_s13 }
   0x6   :  { %18 = vsyncpa [#allocation4], 0 }
   0x7   :  { %20 = vsyncpa [#allocation4 + $0x1], 0 }
   0x8   :  { %21 = vsyncpa [#allocation7], 0 }
   0x9   :  { %22 = vsyncpa [#allocation10], 0 }
   0xa   :  { %23 = vsyncpa [#allocation13], 0 }
   0xb   :  { %24 = vsyncpa [#allocation5], 0 }
   0xc   :  { %26 = vsyncpa [#allocation5 + $0x1], 0  ;;  %s3978_s25 = smov 0   ;;  %s3980_s26 = smov 0  }
   0xd   :  { %s3982_s27 = smov 0   ;;  %s3984_s28 = smov 0  }
   0xe LB: > { %s3887_s29 = smov [#allocation6]   ;;  %s3999_s14 = sadd.s32 4294967295, %s3885_s28   ;;  %s3885_s28 = sphi %s3984_s28, %s4771_s28   ;;  %s3881_s27 = sphi %s3982_s27, %s4770_s27   ;;  %s3877_s26 = sphi %s3980_s26, %s4769_s26   ;;  %s3873_s25 = sphi %s3978_s25, %s4768_s25  }
   0xf   : > { %s359_s30 = sshll.u32 %s3887_s29, 4  ;;  %p2981_p0 = scmp.ge.s32.totalorder %s3885_s28, 1  ;;  %s4004_s30 = int_to_ptr.vmem [resolvable:$true] %s359_s30 }
  0x10   : > { %p4733_p1 = scmp.eq.s32.totalorder %s3999_s14, 0  ;;  %p341_p2 = scmp.lt.s32.totalorder %s3885_s28, 3 }
  0x11   : > { %s3888_s16 = smov [#allocation9]   ;;  %s3889_s19 = smov [#allocation12]  }
  0x12   : > { %p4006_p3 = pnand %p2981_p0, %p341_p2  ;;  %s387_s17 = sshll.u32 %s3888_s16, 4  ;;  %s4019_s17 = int_to_ptr.vmem [resolvable:$true] %s387_s17 }
  0x13   : > { %s411_s20 = sshll.u32 %s3889_s19, 4  ;;  %s3609_s23 = scalar_lea.hbm %s4718_s3, 256  ;;  %s4021_s20 = int_to_ptr.vmem [resolvable:$true] %s411_s20 }
  0x14   : > { %s4742_s15 = scalar_select %p4006_p3, 1, 0 }
  0x15   : > { %p3435_p5 = pneg %p4006_p3  ;;  %p3610_p7 = scmp.ne.s32.totalorder %s4718_s3, %s3609_s23 }
  0x16   : > { %p3616_p11 = scmp.lt.u32.totalorder %s3609_s23, %s4718_s3 }
  0x17   : > { %p4015_p6 = pnand %p3435_p5, %p4733_p1 }
  0x19   : > { %p4031_p8 = pneg %p4015_p6 }
  0x1b   : > { %p3612_p9 = pnand %p4031_p8, %p3610_p7 }
  0x1d   : > { %p3613_p10 = pneg %p3612_p9 }
  0x1f   : > { %p3618_p12 = pnand %p3616_p11, %p3613_p10 }
  0x21   : > { %3621 = shalt.err (!%p3618_p12)
}
  0x22   : > { %s3622_s21 = scalar_lea.vmem %s4004_s30, 256  ;;  %p3630_p5 = scmp.lt.s32.totalorder %s4004_s30, %s4004_s30 }
  0x23   : > { %p3623_p13 = scmp.ne.s32.totalorder %s4004_s30, %s3622_s21  ;;  %p3631_p4 = scmp.lt.s32.totalorder %s3622_s21, %s3622_s21 }
  0x25   : > { %p3625_p0 = pnand %p3623_p13, %p4031_p8  ;;  %p3632_p7 = por %p3631_p4, %p3630_p5 }
  0x27   : > { %p3626_p2 = pneg %p3625_p0 }
  0x29   : > { %p3633_p9 = pnand %p3632_p7, %p3626_p2 }
  0x2b   : > { %3636 = shalt.err (!%p3633_p9)
}
  0x2c   : > { %s4731_s22 = smov 64   ;;  %s3891_s13 = smov 4  }
  0x2d   : > { %3438 = dma.hbm_to_vmem [thread:$0]  (!%p4015_p6), %s4718_s3, 256, %s4004_s30, [#allocation7], %s4731_s22, %s4731_s22, %s3891_s13  }
  0x2e   : > { %s3637_s21 = scalar_lea.hbm %s4721_s6, 16 }
  0x2f   : > { %p3638_p4 = scmp.ne.s32.totalorder %s4721_s6, %s3637_s21  ;;  %p3644_p12 = scmp.lt.u32.totalorder %s3637_s21, %s4721_s6 }
  0x31   : > { %p3640_p10 = pnand %p3638_p4, %p4031_p8 }
  0x33   : > { %p3641_p11 = pneg %p3640_p10 }
  0x35   : > { %p3646_p13 = pnand %p3644_p12, %p3641_p11 }
  0x37   : > { %3649 = shalt.err (!%p3646_p13)
}
  0x38   : > { %s3650_s30 = scalar_lea.vmem %s4019_s17, 16  ;;  %s3657_s10 = scalar_lea.vmem %s4019_s17, 32 }
  0x39   : > { %p3651_p0 = scmp.ne.s32.totalorder %s4019_s17, %s3650_s30  ;;  %p3658_p7 = scmp.lt.s32.totalorder %s4019_s17, %s4019_s17 }
  0x3a   : > { %p3659_p9 = scmp.lt.s32.totalorder %s3657_s10, %s3650_s30 }
  0x3b   : > { %p3653_p2 = pnand %p3651_p0, %p4031_p8 }
  0x3c   : > { %p3660_p4 = por %p3659_p9, %p3658_p7 }
  0x3d   : > { %p3654_p5 = pneg %p3653_p2 }
  0x3f   : > { %p3661_p10 = pnand %p3660_p4, %p3654_p5 }
  0x41   : > { %3664 = shalt.err (!%p3661_p10)
}
  0x42   : > { %3444 = dma.hbm_to_vmem [thread:$0]  (!%p4015_p6), %s4721_s6, 16, %s4019_s17, [#allocation10]  }
  0x43   : > { %s3665_s24 = scalar_lea.hbm %s4723_s8, 16 }
  0x44   : > { %p3666_p11 = scmp.ne.s32.totalorder %s4723_s8, %s3665_s24  ;;  %p3672_p0 = scmp.lt.u32.totalorder %s3665_s24, %s4723_s8 }
  0x46   : > { %p3668_p12 = pnand %p3666_p11, %p4031_p8 }
  0x48   : > { %p3669_p13 = pneg %p3668_p12 }
  0x4a   : > { %p3674_p2 = pnand %p3672_p0, %p3669_p13 }
  0x4c   : > { %3677 = shalt.err (!%p3674_p2)
}
  0x4d   : > { %s3678_s17 = scalar_lea.vmem %s4021_s20, 16  ;;  %s3685_s10 = scalar_lea.vmem %s4021_s20, 32 }
  0x4e   : > { %p3679_p5 = scmp.ne.s32.totalorder %s4021_s20, %s3678_s17  ;;  %p3686_p4 = scmp.lt.s32.totalorder %s4021_s20, %s4021_s20 }
  0x4f   : > { %p3687_p10 = scmp.lt.s32.totalorder %s3685_s10, %s3678_s17 }
  0x50   : > { %p3681_p7 = pnand %p3679_p5, %p4031_p8 }
  0x51   : > { %p3688_p11 = por %p3687_p10, %p3686_p4 }
  0x52   : > { %p3682_p9 = pneg %p3681_p7 }
  0x54   : > { %p3689_p12 = pnand %p3688_p11, %p3682_p9 }
  0x56   : > { %3692 = shalt.err (!%p3689_p12)
}
  0x57   : > { %3450 = dma.hbm_to_vmem [thread:$0]  (!%p4015_p6), %s4723_s8, 16, %s4021_s20, [#allocation13]  }
  0x58   : > { %s3892_s12 = smov [#allocation8]   ;;  %s3893_s24 = smov [#allocation11]  }
  0x59   : > { %s373_s23 = sshll.u32 %s3892_s12, 4  ;;  %s397_s29 = sshll.u32 %s3893_s24, 4  ;;  %s374_s23 = int_to_ptr.vmem [resolvable:$true] %s373_s23  ;;  %s398_s29 = int_to_ptr.vmem [resolvable:$true] %s397_s29 }
  0x5a   : > { %s3693_s30 = scalar_lea.hbm %s4719_s4, 16 }
  0x5b   : > { %p3694_p13 = scmp.ne.s32.totalorder %s4719_s4, %s3693_s30  ;;  %p3700_p5 = scmp.lt.u32.totalorder %s3693_s30, %s4719_s4 }
  0x5d   : > { %p3696_p0 = pnand %p3694_p13, %p4031_p8 }
  0x5f   : > { %p3697_p2 = pneg %p3696_p0 }
  0x61   : > { %p3702_p7 = pnand %p3700_p5, %p3697_p2 }
  0x63   : > { %3705 = shalt.err (!%p3702_p7)
}
  0x64   : > { %s3706_s20 = scalar_lea.vmem %s374_s23, 16  ;;  %s3713_s9 = scalar_lea.vmem %s374_s23, 32 }
  0x65   : > { %p3707_p9 = scmp.ne.s32.totalorder %s374_s23, %s3706_s20  ;;  %p3714_p11 = scmp.lt.s32.totalorder %s374_s23, %s374_s23 }
  0x66   : > { %p3715_p12 = scmp.lt.s32.totalorder %s3713_s9, %s3706_s20 }
  0x67   : > { %p3709_p4 = pnand %p3707_p9, %p4031_p8 }
  0x68   : > { %p3716_p1 = por %p3715_p12, %p3714_p11 }
  0x69   : > { %p3710_p10 = pneg %p3709_p4 }
  0x6b   : > { %p3717_p3 = pnand %p3716_p1, %p3710_p10 }
  0x6d   : > { %3720 = shalt.err (!%p3717_p3)
}
  0x6e   : > { %3441 = dma.hbm_to_vmem [thread:$0]  (!%p4015_p6), %s4719_s4, 16, %s374_s23, [#allocation7]  }
  0x6f   : > { %s3721_s21 = scalar_lea.hbm %s4722_s7, 256 }
  0x70   : > { %p3722_p13 = scmp.ne.s32.totalorder %s4722_s7, %s3721_s21  ;;  %p3728_p3 = scmp.lt.u32.totalorder %s3721_s21, %s4722_s7 }
  0x72   : > { %p3724_p0 = pnand %p3722_p13, %p4031_p8 }
  0x74   : > { %p3725_p1 = pneg %p3724_p0 }
  0x76   : > { %p3730_p2 = pnand %p3728_p3, %p3725_p1 }
  0x78   : > { %3733 = shalt.err (!%p3730_p2)
}
  0x79   : > { %s3734_s20 = scalar_lea.vmem %s398_s29, 256  ;;  %p3742_p4 = scmp.lt.s32.totalorder %s398_s29, %s398_s29 }
  0x7a   : > { %p3735_p5 = scmp.ne.s32.totalorder %s398_s29, %s3734_s20  ;;  %p3743_p10 = scmp.lt.s32.totalorder %s3734_s20, %s3734_s20 }
  0x7c   : > { %p3737_p7 = pnand %p3735_p5, %p4031_p8  ;;  %p3744_p11 = por %p3743_p10, %p3742_p4 }
  0x7e   : > { %p3738_p9 = pneg %p3737_p7 }
  0x80   : > { %p3745_p12 = pnand %p3744_p11, %p3738_p9 }
  0x82   : > { %3748 = shalt.err (!%p3745_p12)
}
  0x83   : > { %s4745_s23 = smov 64   ;;  %s3894_s24 = smov [#allocation14]  }
  0x84   : > { %3447 = dma.hbm_to_vmem [thread:$0]  (!%p4015_p6), %s4722_s7, 256, %s398_s29, [#allocation10], %s4745_s23, %s4745_s23, %s3891_s13  }
  0x85   : > { %s427_s22 = sshll.u32 %s3894_s24, 4  ;;  %s3749_s30 = scalar_lea.hbm %s4726_s11, 256  ;;  %s428_s22 = int_to_ptr.vmem [resolvable:$true] %s427_s22 }
  0x86   : > { %p3750_p13 = scmp.ne.s32.totalorder %s4726_s11, %s3749_s30  ;;  %p3756_p3 = scmp.lt.u32.totalorder %s3749_s30, %s4726_s11 }
  0x88   : > { %p3752_p0 = pnand %p3750_p13, %p4031_p8 }
  0x8a   : > { %p3753_p1 = pneg %p3752_p0 }
  0x8c   : > { %p3758_p2 = pnand %p3756_p3, %p3753_p1 }
  0x8e   : > { %3761 = shalt.err (!%p3758_p2)
}
  0x8f   : > { %s3762_s29 = scalar_lea.vmem %s428_s22, 256  ;;  %p3770_p4 = scmp.lt.s32.totalorder %s428_s22, %s428_s22 }
  0x90   : > { %p3763_p5 = scmp.ne.s32.totalorder %s428_s22, %s3762_s29  ;;  %p3771_p10 = scmp.lt.s32.totalorder %s3762_s29, %s3762_s29 }
  0x92   : > { %p3765_p7 = pnand %p3763_p5, %p4031_p8  ;;  %p3772_p11 = por %p3771_p10, %p3770_p4 }
  0x94   : > { %p3766_p9 = pneg %p3765_p7 }
  0x96   : > { %p3773_p12 = pnand %p3772_p11, %p3766_p9 }
  0x98   : > { %3776 = shalt.err (!%p3773_p12)
}
  0x99   : > { %3453 = dma.hbm_to_vmem [thread:$0]  (!%p4015_p6), %s4726_s11, 256, %s428_s22, [#allocation13], %s4745_s23, %s4745_s23, %s3891_s13  }
  0x9a   : > { %s2980_s18 = sadd.s32 4294967294, %s3885_s28   ;;  %s4165_s16 = sadd.s32 1, %s3885_s28  }
  0x9b   : > { %s36_s24 = ssub.s32 %s3885_s28, %s4165_s16  ;;  %s39_s19 = sadd.s32 1, %s3881_s27 }
  0x9c   : > { %p37_p8 = scmp.eq.s32.totalorder %s36_s24, 0  ;;  %p46_p13 = scmp.ne.s32.totalorder %s3881_s27, %s3877_s26 }
  0x9d   : > { %p47_p0 = scmp.eq.s32.totalorder %s3885_s28, 0  ;;  %p52_p1 = scmp.ne.s32.totalorder %s3877_s26, %s3873_s25 }
  0x9e   : > { %s4176_s21 = scalar_select %p37_p8, %s3881_s27, %s39_s19  }
  0x9f   : > { %p4178_p3 = por %p47_p0, %p46_p13  ;;  %p4747_p2 = scmp.eq.s32.totalorder %s3999_s14, 0 }
  0xa0   : > { %p328_p5 = scmp.eq.s32.totalorder %s3999_s14, 1  ;;  %p334_p7 = scmp.eq.s32.totalorder %s2980_s18, 1 }
  0xa1   : > { %p4184_p6 = por %p4747_p2, %p52_p1  ;;  %p3468_p9 = scmp.lt.s32.totalorder %s3885_s28, 2 }
  0xa2   : > { %s444_s23 = sand.u32 1, %s3881_s27   ;;  %p4191_p4 = por %p328_p5, %p46_p13 }
  0xa3   : > { %p4195_p10 = por %p334_p7, %p52_p1  ;;  %s2989_s10 = sshll.u32 %s444_s23, 5 }
  0xa4   : > { %s4749_s22 = scalar_select %p4191_p4, 1, 0 }
  0xa5   : > { %s4750_s17 = scalar_select %p4195_p10, 1, 0 }
  0xa6   : > { %s3077_s2 = sshll.u32 %s3885_s28, 9  ;;  %s448_s12 = scalar_lea.vmem [#allocation3], %s2989_s10 }
  0xa7   : > { %s4203_s9 = scalar_lea.hbm %s4715_s0, %s3077_s2  ;;  %s455_s18 = sshll.u32 %s448_s12, 4  ;;  %s4205_s18 = int_to_ptr.vmem [resolvable:$true] %s455_s18 }
  0xa8   : > { %p4209_p11 = pnand %p3468_p9, %p4178_p3  ;;  %s4213_s19 = scalar_lea.sflag [#allocation4], %s444_s23 }
  0xa9   : > { %s3777_s20 = scalar_lea.hbm %s4203_s9, 512  ;;  %s3782_s30 = scalar_lea.hbm %s4715_s0, 1024 }
  0xaa   : > { %p3778_p12 = scmp.ne.s32.totalorder %s4203_s9, %s3777_s20  ;;  %p3779_p8 = pneg %p4209_p11 }
  0xab   : > { %p3783_p1 = scmp.lt.u32.totalorder %s4203_s9, %s4715_s0  ;;  %p3784_p3 = scmp.lt.u32.totalorder %s3782_s30, %s3777_s20 }
  0xac   : > { %p3780_p13 = pnand %p3779_p8, %p3778_p12  ;;  %p3786_p5 = scmp.lt.u32.totalorder %s3777_s20, %s4203_s9 }
  0xad   : > { %p3785_p2 = por %p3784_p3, %p3783_p1 }
  0xae   : > { %p3781_p0 = pneg %p3780_p13 }
  0xaf   : > { %p3787_p7 = por %p3786_p5, %p3785_p2 }
  0xb1   : > { %p3788_p9 = pnand %p3787_p7, %p3781_p0 }
  0xb3   : > { %3791 = shalt.err (!%p3788_p9)
}
  0xb4   : > { %s3792_s23 = scalar_lea.vmem %s4205_s18, 512  ;;  %s3895_s10 = smov [#allocation3]  }
  0xb5   : > { %p3793_p12 = scmp.ne.s32.totalorder %s4205_s18, %s3792_s23  ;;  %s3797_s2 = sshll.u32 %s3895_s10, 4  ;;  %s3798_s2 = int_to_ptr.vmem [resolvable:$false] %s3797_s2 }
  0xb6   : > { %s3799_s29 = scalar_lea.vmem %s3798_s2, 1024  ;;  %p3800_p4 = scmp.lt.s32.totalorder %s4205_s18, %s3798_s2 }
  0xb7   : > { %p3795_p13 = pnand %p3793_p12, %p3779_p8  ;;  %p3801_p1 = scmp.lt.s32.totalorder %s3799_s29, %s3792_s23 }
  0xb9   : > { %p3796_p10 = pneg %p3795_p13  ;;  %p3802_p3 = por %p3801_p1, %p3800_p4 }
  0xbb   : > { %p3803_p2 = pnand %p3802_p3, %p3796_p10 }
  0xbd   : > { %3806 = shalt.err (!%p3803_p2)
}
  0xbe   : > { %s3896_s20 = smov 128   ;;  %s3897_s30 = smov 8  }
  0xbf   : > { %3457 = dma.hbm_to_vmem [thread:$0]  (!%p4209_p11), %s4203_s9, 512, %s4205_s18, %s4213_s19, %s3896_s20, %s3896_s20, %s3897_s30  }
  0xc0   : > { %p4752_p8 = scmp.ne.s32.totalorder %s4742_s15, 0 }
  0xc1   : > { %s4244_s12 = sand.u32 (!%p4752_p8), 1, %s3877_s26  }
  0xc2   : > { %467 = sbr.rel (%p4752_p8) target bundleno = 3910 (0xf46), region = 72  ;;  %s2993_s23 = sshll.u32 (!%p4752_p8), %s4244_s12, 5 }
  0xc3   : > { %s470_s10 = scalar_lea.sflag (!%p4752_p8), [#allocation4], %s4244_s12  ;;  %s4250_s2 = scalar_lea.vmem (!%p4752_p8), [#allocation3], %s2993_s23 }
  0xc9   : > { %3852 = dma.done.wait (%p4184_p6), %s470_s10, 512  }
  0xca   : > { %3854 = vsyncadd (%p4184_p6), %s470_s10, 4294966784  ;;  %p4753_p4 = scmp.eq.s32.totalorder %s3999_s14, 0 }
  0xcc   : > { %3856 = dma.done.wait (%p4753_p4), [#allocation7], 272   ;;  %p4754_p10 = pmov %p4753_p4 }
  0xcd   : > { %p4755_p11 = pmov %p4753_p4 }
  0xce   : > { %3858 = vsyncadd (%p4754_p10), [#allocation7], 4294967024 }
  0xcf   : > { %3860 = dma.done.wait (%p4755_p11), [#allocation10], 272   ;;  %p4756_p0 = pmov %p4753_p4 }
  0xd1   : > { %3862 = vsyncadd (%p4756_p0), [#allocation10], 4294967024  ;;  %p4757_p5 = pmov %p4756_p0 }
  0xd2   : > { %p4758_p7 = pmov %p4756_p0 }
  0xd3   : > { %3864 = dma.done.wait (%p4757_p5), [#allocation13], 272  }
  0xd4   : > { %3866 = vsyncadd (%p4758_p7), [#allocation13], 4294967024  ;;  %vm547_vm0 = vcmask 261120   ;;  %v543_v0 = vld [vmem:[%s4250_s2] sm:$0xff]  ;;  %v545_v1 = vld [vmem:[%s4250_s2 + $0x10] sm:$0xff]  ;;  %s4759_s30 = sld [smem:[#allocation21_spill]] }
  0xd5   : > { %v544_v2 = vld [vmem:[%s4250_s2 + $0x8] sm:$0xff]  ;;  %v548_v3 = vsel %vm547_vm0, %v543_v0, 0.0  ;;  %v554_v4 = vsel %vm547_vm0, %v545_v1, 0.0  ;;  %v546_v5 = vld [vmem:[%s4250_s2 + $0x18] sm:$0xff]  ;;  %v3527_v28 = vld [vmem:[#allocation6] sm:$0xff]   ;;  %vm3899_vm1 = vmmov 0  }
  0xd6   : > { %549 = vadd.xlane.f32.xlu0 %v548_v3  ;;  %555 = vadd.xlane.f32.xlu1 %v554_v4  ;;  %v551_v6 = vsel %vm547_vm0, %v544_v2, 0.0  ;;  %v557_v7 = vsel %vm547_vm0, %v546_v5, 0.0  ;;  %v3528_v29 = vld [vmem:[%s4720_s5] sm:$0xff]   ;;  %v3529_v30 = vld [vmem:[#allocation6 + $0x8] sm:$0xff]   ;;  %v3530_v31 = vld [vmem:[%s4720_s5 + $0x8] sm:$0xff]   ;;  %vm883_vm2 = vcmask 64512  }
  0xd7   : > { %3175 = vmatprep.subr.bf16.mxu0 %v3527_v28  ;;  %3183 = vmatprep.subr.bf16.mxu1 %v3528_v29  ;;  %v3531_v32 = vld [vmem:[#allocation11] sm:$0xff]   ;;  %v3001_v47 = vld [vmem:[%s4716_s1] ss:$0 sm:$0xff]  ;;  %v3012_v3 = vld [vmem:[#allocation9] ss:$0 sm:$0xff]  ;;  %vm1119_vm3 = vcmask 1043456  }
  0xd8   : > { %3176 = vmatpush3.bf16.msra.mxu0 %v3527_v28  ;;  %3184 = vmatpush3.bf16.msra.mxu1 %v3528_v29  ;;  %s3900_s10 = smov 120   ;;  %s3901_s15 = smov 112   ;;  %vm1755_vm4 = vcmask 130112   ;;  %vm2208_vm5 = vcmask 195712   ;;  %vm2661_vm6 = vcmask 261312  }
  0xd9   : > { %3177 = vmatprep.subr.bf16.mxu0 %v3529_v30  ;;  %3185 = vmatprep.subr.bf16.mxu1 %v3530_v31  ;;  %s3902_s13 = smov 104   ;;  %s4736_s9 = smov 8  }
  0xda   : > { %552 = vadd.xlane.f32.xlu0 %v551_v6  ;;  %558 = vadd.xlane.f32.xlu1 %v557_v7  ;;  %v3002_v53 = vld [vmem:[%s4759_s30] ss:$0 sm:$0xff]  ;;  %s3904_s18 = smov 16   ;;  %s3905_s24 = smov 24  }
  0xdb   : > { %s4760_s20 = sld [smem:[#allocation22_spill]]  ;;  %s4762_s29 = sld [smem:[#allocation24_spill]] }
  0xdc   : > { %3178 = vmatpush3.bf16.msra.mxu0 %v3529_v30  ;;  %3186 = vmatpush3.bf16.msra.mxu1 %v3530_v31  ;;  %s539_s30 = scalar_lea.vmem [#allocation15], %s2993_s23  ;;  %p4764_p9 = scmp.ne.s32.totalorder %s4749_s22, 0 }
  0xdd   : > { %3191 = vmatprep.subr.bf16.mxu0 %v3531_v32  ;;  %s3906_s19 = smov [#allocation15]  }
 0x163   : > { %v550_v8 = vpop.xlane.xlu0 %549  ;;  %v556_v9 = vpop.xlane.xlu1 %555 }
 0x164   : > { %v561_v10 = vmul.f32 0.03125, %v550_v8  ;;  %v563_v11 = vmul.f32 0.03125, %v556_v9 }
 0x166   : > { %v565_v12 = vsub.f32 %v543_v0, %v561_v10  ;;  %v567_v13 = vsub.f32 %v545_v1, %v563_v11  ;;  %v3532_v1 = vld [vmem:[#allocation11 + $0x8] sm:$0xff]  }
 0x167   : > { %v553_v14 = vpop.xlane.xlu0 %552  ;;  %v559_v15 = vpop.xlane.xlu1 %558 }
 0x168   : > { %v562_v16 = vmul.f32 0.03125, %v553_v14  ;;  %v564_v17 = vmul.f32 0.03125, %v559_v15  ;;  %v569_v18 = vmul.f32 %v565_v12, %v565_v12  ;;  %v571_v19 = vmul.f32 %v567_v13, %v567_v13  ;;  %v3003_v15 = vld [vmem:[#allocation8] ss:$0 sm:$0xff] }
 0x16a   : > { %v566_v20 = vsub.f32 %v544_v2, %v562_v16  ;;  %v568_v21 = vsub.f32 %v546_v5, %v564_v17  ;;  %v573_v22 = vsel %vm547_vm0, %v569_v18, 0.0  ;;  %v579_v23 = vsel %vm547_vm0, %v571_v19, 0.0  ;;  %v3021_v19 = vld [vmem:[#allocation12] ss:$0 sm:$0xff] }
 0x16b   : > { %574 = vadd.xlane.f32.xlu0 %v573_v22  ;;  %v3898_v2 = vmov 0.0  }
 0x16c   : > { %v570_v24 = vmul.f32 %v566_v20, %v566_v20  ;;  %v572_v25 = vmul.f32 %v568_v21, %v568_v21  ;;  %3199 = vmatprep.subr.bf16.mxu1 %v3898_v2 }
 0x16e   : > { %v576_v26 = vsel %vm547_vm0, %v570_v24, 0.0  ;;  %v582_v27 = vsel %vm547_vm0, %v572_v25, 0.0 }
 0x16f   : > { %580 = vadd.xlane.f32.xlu0 %v579_v23  ;;  %577 = vadd.xlane.f32.xlu1 %v576_v26 }
 0x173   : > { %583 = vadd.xlane.f32.xlu1 %v582_v27 }
 0x1f8   : > { %v575_v33 = vpop.xlane.xlu0 %574 }
 0x1f9   : > { %v585_v34 = vmul.f32 0.03125, %v575_v33 }
 0x1fb   : > { %v589_v35 = vadd.f32 1e-05, %v585_v34 }
 0x1fc   : > { %v578_v36 = vpop.xlane.xlu1 %577  ;;  %v581_v37 = vpop.xlane.xlu0 %580 }
 0x1fd   : > { %3537 = vrsqrt.f32 %v589_v35  ;;  %v586_v38 = vmul.f32 0.03125, %v578_v36  ;;  %v587_v39 = vmul.f32 0.03125, %v581_v37 }
 0x1ff   : > { %v590_v40 = vadd.f32 1e-05, %v586_v38  ;;  %v591_v41 = vadd.f32 1e-05, %v587_v39 }
 0x200   : > { %v584_v42 = vpop.xlane.xlu1 %583 }
 0x201   : > { %3539 = vrsqrt.f32 %v590_v40  ;;  %v588_v43 = vmul.f32 0.03125, %v584_v42 }
 0x202   : > { %3541 = vrsqrt.f32 %v591_v41 }
 0x203   : > { %v592_v44 = vadd.f32 1e-05, %v588_v43 }
 0x205   : > { %3543 = vrsqrt.f32 %v592_v44 }
 0x207   : > { %v3538_v45 = vpop.eup %3537 }
 0x208   : > { %v597_v46 = vmul.f32 %v3538_v45, %v565_v12 }
 0x20a   : > { %v608_v51 = vmul.f32 %v3001_v47, %v597_v46 }
 0x20b   : > { %v3540_v48 = vpop.eup %3539 }
 0x20c   : > { %v3542_v49 = vpop.eup %3541  ;;  %v598_v50 = vmul.f32 %v3540_v48, %v566_v20  ;;  %v619_v57 = vadd.f32 %v3002_v53, %v608_v51 }
 0x20d   : > { %v599_v52 = vmul.f32 %v3542_v49, %v567_v13 }
 0x20e   : > { %v609_v54 = vmul.f32 %v3001_v47, %v598_v50 }
 0x20f   : > { %v3544_v55 = vpop.eup %3543  ;;  %v610_v59 = vmul.f32 %v3001_v47, %v599_v52 }
 0x210   : > { %v600_v56 = vmul.f32 %v3544_v55, %v568_v21  ;;  %v620_v58 = vadd.f32 %v3002_v53, %v609_v54 }
 0x211   : > { %v621_v62 = vadd.f32 %v3002_v53, %v610_v59 }
 0x212   : > { %v623_v60 = vpack.c.bf16 %v620_v58, %v619_v57  ;;  %v611_v61 = vmul.f32 %v3001_v47, %v600_v56 }
 0x214   : > { %3179 = vmatprep.mubr.msk.bf16.mxu0 %vm547_vm0, %v623_v60  ;;  %3187 = vmatprep.mubr.msk.bf16.mxu1 %vm547_vm0, %v623_v60  ;;  %v622_v63 = vadd.f32 %v3002_v53, %v611_v61 }
 0x216   : > { %v624_v0 = vpack.c.bf16 %v622_v63, %v621_v62 }
 0x218   : > { %3180 = vmatmul.mubr.msk.bf16.vlgmr.msra.gmra.mrb[0].mxu0 %vm547_vm0, %v624_v0  ;;  %3188 = vmatmul.mubr.msk.bf16.vlgmr.msra.gmra.mrb[0].mxu1 %vm547_vm0, %v624_v0 }
 0x219   : > { %3192 = vmatpush3.bf16.msra.mxu0 %v3531_v32  ;;  %3195 = vmatprep.mubr.msk.bf16.mxu0 %vm547_vm0, %v623_v60 }
 0x21a   : > { %3193 = vmatprep.subr.bf16.mxu0 %v3532_v1  ;;  %3201 = vmatprep.mubr.msk.bf16.mxu1 %vm3899_vm1, %v3898_v2 }
 0x21d   : > { %3194 = vmatpush3.bf16.msra.mxu0 %v3532_v1 }
 0x21e   : > { %3205 = vmatprep.subr.bf16.mxu0 %v3898_v2 }
 0x220   : > { %3196 = vmatmul.mubr.msk.bf16.vlgmr.msra.gmra.mrb[4].mxu0 %vm547_vm0, %v624_v0 }
 0x221   : > { %3207 = vmatprep.mubr.msk.bf16.mxu0 %vm3899_vm1, %v3898_v2 }
 0x2eb   : > { %v3181_v4 = vpop.f32.mrb[0].mxu0  ;;  %v3189_v5 = vpop.f32.mrb[0].mxu1 }
 0x2ec   : > { %v688_v6 = vpop.f32.mrb[1].mxu0  ;;  %v772_v7 = vpop.f32.mrb[1].mxu1  ;;  %v781_v16 = vadd.f32 %v3189_v5, %v3012_v3  ;;  %v697_v36 = vadd.f32 %v3181_v4, %v3003_v15 }
 0x2ed   : > { %v773_v8 = vadd.f32 %v3012_v3, %v772_v7  ;;  %v3182_v9 = vpop.f32.mrb[2].mxu0  ;;  %v3190_v10 = vpop.f32.mrb[2].mxu1  ;;  %v689_v20 = vadd.f32 %v3003_v15, %v688_v6 }
 0x2ee   : > { %v691_v11 = vpop.f32.mrb[3].mxu0  ;;  %v775_v12 = vpop.f32.mrb[3].mxu1  ;;  %v784_v21 = vadd.f32 %v3190_v10, %v3012_v3  ;;  %v4315_v26 = vpack.c.bf16 %v781_v16, %v781_v16  ;;  %v700_v39 = vadd.f32 %v3182_v9, %v3003_v15  ;;  %v4342_v41 = vpack.c.bf16 %v697_v36, %v697_v36 }
 0x2ef   : > { %v4304_v13 = vpack.c.bf16 %v773_v8, %v773_v8  ;;  %v776_v14 = vadd.f32 %v3012_v3, %v775_v12  ;;  %v692_v27 = vadd.f32 %v3003_v15, %v691_v11  ;;  %v4320_v31 = vpack.c.bf16 %v689_v20, %v689_v20 }
 0x2f0   : > { %v4322_v32 = vpack.c.bf16 %v784_v21, %v784_v21  ;;  %v980_v35 = vsel %vm883_vm2, %v4315_v26, 0  ;;  %v4346_v43 = vpack.c.bf16 %v700_v39, %v700_v39 }
 0x2f1   : > { %v4306_v17 = vpack.c.bf16 %v776_v14, %v776_v14  ;;  %v888_v18 = vsel %vm883_vm2, %v4304_v13, 0  ;;  %v4324_v33 = vpack.c.bf16 %v692_v27, %v692_v27 }
 0x2f2   : > { %3200 = vmatpush3.bf16.xpose.msra.mxu1 %v888_v18  ;;  %v1026_v38 = vsel %vm883_vm2, %v4322_v32, 0 }
 0x2f3   : > { %v3197_v22 = vpop.f32.mrb[4].mxu0  ;;  %v934_v23 = vsel %vm883_vm2, %v4306_v17, 0  ;;  %3211 = vmatprep.subr.bf16.mxu1 %v3898_v2 }
 0x2f4   : > { %v4313_v24 = vadd.f32 %v3197_v22, %v3021_v19  ;;  %v856_v25 = vpop.f32.mrb[5].mxu0  ;;  %3206 = vmatpush3.bf16.xpose.msra.mxu0 %v934_v23 }
 0x2f5   : > { %v3198_v28 = vpop.f32.mrb[6].mxu0  ;;  %3217 = vmatprep.subr.bf16.mxu0 %v3898_v2  ;;  %v857_v34 = vadd.f32 %v3021_v19, %v856_v25 }
 0x2f6   : > { %v4318_v29 = vadd.f32 %v3198_v28, %v3021_v19  ;;  %v859_v30 = vpop.f32.mrb[7].mxu0 }
 0x2f7   : > { %v860_v37 = vadd.f32 %v3021_v19, %v859_v30  ;;  %v4339_v40 = vpack.c.bf16 %v857_v34, %v857_v34 }
 0x2f9   : > { %3202 = vmatmul.mubr.msk.bf16.vlgmr.msra.gmra.mrb[4].mxu1 %vm883_vm2, %v4320_v31  ;;  %v4344_v42 = vpack.c.bf16 %v860_v37, %v860_v37  ;;  %v1121_v44 = vsel %vm1119_vm3, %v4339_v40, 0 }
 0x2fa   : > { %3212 = vmatpush3.bf16.xpose.msra.mxu1 %v980_v35  ;;  %3213 = vmatprep.mubr.msk.bf16.mxu1 %vm3899_vm1, %v3898_v2  ;;  %v4388_v35 = vpack.c.bf16 %v4313_v24, %v4313_v24 }
 0x2fb   : > { %3208 = vmatmul.mubr.msk.bf16.vlgmr.msra.gmra.mrb[8].mxu0 %vm883_vm2, %v4324_v33  ;;  %3223 = vmatprep.subr.bf16.mxu1 %v3898_v2  ;;  %v1167_v45 = vsel %vm1119_vm3, %v4344_v42, 0 }
 0x2fc   : > { %3218 = vmatpush3.bf16.xpose.msra.mxu0 %v1026_v38  ;;  %3219 = vmatprep.mubr.msk.bf16.mxu0 %vm3899_vm1, %v3898_v2  ;;  %v4392_v38 = vpack.c.bf16 %v4318_v29, %v4318_v29 }
 0x2fd   : > { %3229 = vmatprep.subr.bf16.mxu0 %v3898_v2 }
 0x2fe   : > { %v1259_v24 = vsel %vm1119_vm3, %v4392_v38, 0 }
 0x301   : > { %3214 = vmatmul.mubr.msk.bf16.vlgmr.msra.gmra.mrb[8].mxu1 %vm883_vm2, %v4342_v41 }
 0x302   : > { %3224 = vmatpush3.bf16.msra.mxu1 %v1121_v44  ;;  %3225 = vmatprep.mubr.msk.bf16.mxu1 %vm3899_vm1, %v3898_v2 }
 0x303   : > { %3220 = vmatmul.mubr.msk.bf16.vlgmr.msra.gmra.mrb[12].mxu0 %vm883_vm2, %v4346_v43  ;;  %3235 = vmatprep.subr.bf16.mxu1 %v3898_v2 }
 0x304   : > { %3230 = vmatpush3.bf16.msra.mxu0 %v1167_v45  ;;  %3231 = vmatprep.mubr.msk.bf16.mxu0 %vm3899_vm1, %v3898_v2  ;;  %v1213_v45 = vsel %vm1119_vm3, %v4388_v35, 0 }
 0x305   : > { %3241 = vmatprep.subr.bf16.mxu0 %v3898_v2 }
 0x3cc   : > { %v924_v46 = vpop.f32.mrb[4].mxu1 }
 0x3cd   : > { %v3203_v47 = vpop.f32.mrb[5].mxu1  ;;  %v1068_v48 = vsel %vm883_vm2, %v924_v46, -inf }
 0x3ce   : > { %v970_v49 = vpop.f32.mrb[8].mxu0  ;;  %1069 = vmax.xlane.f32.xlu0 %v1068_v48  ;;  %v927_v50 = vpop.f32.mrb[6].mxu1 }
 0x3cf   : > { %v3204_v51 = vpop.f32.mrb[7].mxu1  ;;  %v3209_v52 = vpop.f32.mrb[9].mxu0  ;;  %v1071_v53 = vsel %vm883_vm2, %v970_v49, -inf }
 0x3d0   : > { %1072 = vmax.xlane.f32.xlu1 %v1071_v53  ;;  %v973_v54 = vpop.f32.mrb[10].mxu0 }
 0x3d1   : > { %v3210_v55 = vpop.f32.mrb[11].mxu0 }
 0x3d4   : > { %v1016_v56 = vpop.f32.mrb[8].mxu1 }
 0x3d5   : > { %v3215_v57 = vpop.f32.mrb[9].mxu1  ;;  %v1074_v58 = vsel %vm883_vm2, %v1016_v56, -inf }
 0x3d6   : > { %v1062_v59 = vpop.f32.mrb[12].mxu0  ;;  %1075 = vmax.xlane.f32.xlu0 %v1074_v58  ;;  %v1019_v60 = vpop.f32.mrb[10].mxu1 }
 0x3d7   : > { %v3216_v61 = vpop.f32.mrb[11].mxu1  ;;  %v3221_v62 = vpop.f32.mrb[13].mxu0  ;;  %v1077_v63 = vsel %vm883_vm2, %v1062_v59, -inf }
 0x3d8   : > { %1078 = vmax.xlane.f32.xlu1 %v1077_v63  ;;  %v1065_v0 = vpop.f32.mrb[14].mxu0 }
 0x3d9   : > { %v3222_v1 = vpop.f32.mrb[15].mxu0 }
 0x45b   : > { %v1070_v3 = vpop.xlane.xlu0 %1069 }
 0x45c   : > { %v1080_v4 = vsub.f32 %v924_v46, %v1070_v3 }
 0x45d   : > { %v1073_v5 = vpop.xlane.xlu1 %1072 }
 0x45e   : > { %v1084_v6 = vmul.f32 1.442695, %v1080_v4  ;;  %v1081_v7 = vsub.f32 %v970_v49, %v1073_v5 }
 0x460   : > { %3545 = vpow2.f32 %v1084_v6  ;;  %v1086_v8 = vmul.f32 1.442695, %v1081_v7 }
 0x462   : > { %3547 = vpow2.f32 %v1086_v8 }
 0x463   : > { %v1076_v9 = vpop.xlane.xlu0 %1075 }
 0x464   : > { %v1082_v10 = vsub.f32 %v1016_v56, %v1076_v9 }
 0x465   : > { %v1079_v20 = vpop.xlane.xlu1 %1078 }
 0x466   : > { %v1088_v11 = vmul.f32 1.442695, %v1082_v10  ;;  %v1083_v21 = vsub.f32 %v1062_v59, %v1079_v20 }
 0x468   : > { %3549 = vpow2.f32 %v1088_v11  ;;  %v1090_v22 = vmul.f32 1.442695, %v1083_v21 }
 0x46a   : > { %v3546_v12 = vpop.eup %3545  ;;  %3551 = vpow2.f32 %v1090_v22 }
 0x46b   : > { %v1092_v14 = vsel %vm883_vm2, %v3546_v12, 0.0 }
 0x46c   : > { %v3548_v15 = vpop.eup %3547  ;;  %1093 = vadd.xlane.f32.xlu0 %v1092_v14 }
 0x46d   : > { %v1095_v16 = vsel %vm883_vm2, %v3548_v15, 0.0 }
 0x46e   : > { %1096 = vadd.xlane.f32.xlu1 %v1095_v16 }
 0x472   : > { %v3550_v18 = vpop.eup %3549 }
 0x473   : > { %v1098_v19 = vsel %vm883_vm2, %v3550_v18, 0.0 }
 0x474   : > { %1099 = vadd.xlane.f32.xlu0 %v1098_v19  ;;  %v3552_v23 = vpop.eup %3551 }
 0x475   : > { %v1101_v25 = vsel %vm883_vm2, %v3552_v23, 0.0 }
 0x47f   : > { %1357 = vrot.lane.b32.xlu1 %v4306_v17, %s3900_s10 }
 0x483   : > { %1305 = vrot.lane.b32.xlu1 %v4320_v31, %s3900_s10 }
 0x48a   : > { %1307 = vrot.lane.b32.xlu0 %v4304_v13, %s3900_s10 }
 0x48e   : > { %1407 = vrot.lane.b32.xlu0 %v4315_v26, %s3900_s10 }
 0x492   : > { %1405 = vrot.lane.b32.xlu0 %v4342_v41, %s3900_s10 }
 0x4a7   : > { %1102 = vadd.xlane.f32.xlu1 %v1101_v25 }
 0x4b8   : > { %1355 = vrot.lane.b32.xlu1 %v4324_v33, %s3900_s10 }
 0x4bc   : > { %1457 = vrot.lane.b32.xlu1 %v4322_v32, %s3900_s10 }
 0x4c0   : > { %1455 = vrot.lane.b32.xlu1 %v4346_v43, %s3900_s10 }
 0x4f9   : > { %v1094_v27 = vpop.xlane.xlu0 %1093 }
 0x4fa   : > { %3553 = vrcp.f32 %v1094_v27 }
 0x4fb   : > { %v1097_v28 = vpop.xlane.xlu1 %1096 }
 0x4fc   : > { %3555 = vrcp.f32 %v1097_v28 }
 0x4ff   : > { %v1358_v51 = vpop.permute.xlu1 %1357 }
 0x500   : > { %v1363_v61 = vsel %vm883_vm2, %v1358_v51, 0 }
 0x501   : > { %v1100_v30 = vpop.xlane.xlu0 %1099 }
 0x502   : > { %3557 = vrcp.f32 %v1100_v30 }
 0x503   : > { %v1306_v53 = vpop.permute.xlu1 %1305 }
 0x504   : > { %v3554_v34 = vpop.eup %3553 }
 0x505   : > { %v1108_v36 = vmul.f32 %v3554_v34, %v3546_v12  ;;  %v1308_v48 = vpop.permute.xlu0 %1307 }
 0x506   : > { %v3556_v37 = vpop.eup %3555  ;;  %v1313_v50 = vsel %vm883_vm2, %v1308_v48, 0 }
 0x507   : > { %v1109_v39 = vmul.f32 %v3556_v37, %v3548_v15  ;;  %v1112_v44 = vpack.c.bf16 %v1108_v36, %v1108_v36 }
 0x509   : > { %3226 = vmatmul.mubr.msk.bf16.vlgmr.msra.gmra.mrb[12].mxu1 %vm883_vm2, %v1112_v44  ;;  %v1113_v46 = vpack.c.bf16 %v1109_v39, %v1109_v39  ;;  %v1408_v52 = vpop.permute.xlu0 %1407 }
 0x50a   : > { %3236 = vmatpush3.bf16.msra.mxu1 %v1213_v45  ;;  %3237 = vmatprep.mubr.msk.bf16.mxu1 %vm3899_vm1, %v3898_v2  ;;  %v1413_v54 = vsel %vm883_vm2, %v1408_v52, 0 }
 0x50b   : > { %3232 = vmatmul.mubr.msk.bf16.vlgmr.msra.gmra.mrb[16].mxu0 %vm883_vm2, %v1113_v46  ;;  %3247 = vmatprep.subr.bf16.mxu1 %v3898_v2 }
 0x50c   : > { %v3558_v29 = vpop.eup %3557  ;;  %3242 = vmatpush3.bf16.msra.mxu0 %v1259_v24  ;;  %3243 = vmatprep.mubr.msk.bf16.mxu0 %vm3899_vm1, %v3898_v2 }
 0x50d   : > { %v1110_v47 = vmul.f32 %v3558_v29, %v3550_v18  ;;  %3253 = vmatprep.subr.bf16.mxu0 %v3898_v2  ;;  %v1406_v55 = vpop.permute.xlu0 %1405 }
 0x50f   : > { %v1114_v49 = vpack.c.bf16 %v1110_v47, %v1110_v47 }
 0x511   : > { %3238 = vmatmul.mubr.msk.bf16.vlgmr.msra.gmra.mrb[16].mxu1 %vm883_vm2, %v1114_v49 }
 0x512   : > { %3249 = vmatprep.mubr.msk.bf16.mxu1 %vm3899_vm1, %v3898_v2 }
 0x513   : > { %3248 = vmatpush3.bf16.xpose.msra.mxu1 %v1313_v50 }
 0x514   : > { %3259 = vmatprep.subr.bf16.mxu1 %v3898_v2 }
 0x51a   : > { %3250 = vmatmul.mubr.msk.bf16.vlgmr.msra.gmra.mrb[20].mxu1 %vm883_vm2, %v1306_v53 }
 0x51b   : > { %3260 = vmatpush3.bf16.xpose.msra.mxu1 %v1413_v54  ;;  %3261 = vmatprep.mubr.msk.bf16.mxu1 %vm3899_vm1, %v3898_v2 }
 0x51c   : > { %3271 = vmatprep.subr.bf16.mxu1 %v3898_v2 }
 0x522   : > { %3262 = vmatmul.mubr.msk.bf16.vlgmr.msra.gmra.mrb[24].mxu1 %vm883_vm2, %v1406_v55 }
 0x523   : > { %3273 = vmatprep.mubr.msk.bf16.mxu1 %vm3899_vm1, %v3898_v2 }
 0x534   : > { %v1103_v56 = vpop.xlane.xlu1 %1102 }
 0x535   : > { %3559 = vrcp.f32 %v1103_v56 }
 0x538   : > { %v1356_v60 = vpop.permute.xlu1 %1355 }
 0x53c   : > { %v1458_v62 = vpop.permute.xlu1 %1457 }
 0x53d   : > { %v1463_v63 = vsel %vm883_vm2, %v1458_v62, 0 }
 0x53f   : > { %v3560_v57 = vpop.eup %3559 }
 0x540   : > { %v1111_v58 = vmul.f32 %v3560_v57, %v3552_v23  ;;  %v1456_v0 = vpop.permute.xlu1 %1455 }
 0x542   : > { %v1115_v59 = vpack.c.bf16 %v1111_v58, %v1111_v58 }
 0x544   : > { %3244 = vmatmul.mubr.msk.bf16.vlgmr.msra.gmra.mrb[20].mxu0 %vm883_vm2, %v1115_v59 }
 0x545   : > { %3254 = vmatpush3.bf16.xpose.msra.mxu0 %v1363_v61  ;;  %3255 = vmatprep.mubr.msk.bf16.mxu0 %vm3899_vm1, %v3898_v2 }
 0x546   : > { %3265 = vmatprep.subr.bf16.mxu0 %v3898_v2 }
 0x54c   : > { %3256 = vmatmul.mubr.msk.bf16.vlgmr.msra.gmra.mrb[24].mxu0 %vm883_vm2, %v1356_v60 }
 0x54d   : > { %3266 = vmatpush3.bf16.xpose.msra.mxu0 %v1463_v63  ;;  %3267 = vmatprep.mubr.msk.bf16.mxu0 %vm3899_vm1, %v3898_v2 }
 0x54e   : > { %3277 = vmatprep.subr.bf16.mxu0 %v3898_v2 }
 0x554   : > { %3268 = vmatmul.mubr.msk.bf16.vlgmr.msra.gmra.mrb[28].mxu0 %vm883_vm2, %v1456_v0 }
 0x555   : > { %3279 = vmatprep.mubr.msk.bf16.mxu0 %vm3899_vm1, %v3898_v2 }
 0x5dc   : > { %v1157_v1 = vpop.f32.mrb[12].mxu1 }
 0x5dd   : > { %v3227_v3 = vpop.f32.mrb[13].mxu1 }
 0x5de   : > { %v1160_v4 = vpop.f32.mrb[14].mxu1  ;;  %v1203_v5 = vpop.f32.mrb[16].mxu0 }
 0x5df   : > { %v1301_v6 = vpack.c.bf16 %v1203_v5, %v1157_v1  ;;  %v3228_v7 = vpop.f32.mrb[15].mxu1  ;;  %v3233_v8 = vpop.f32.mrb[17].mxu0 }
 0x5e0   : > { %v1206_v9 = vpop.f32.mrb[18].mxu0 }
 0x5e1   : > { %1303 = vst.msk [vmem:[#allocation2] sm:$0xff] %vm883_vm2, %v1301_v6  ;;  %v3234_v10 = vpop.f32.mrb[19].mxu0 }
 0x5e4   : > { %v1249_v11 = vpop.f32.mrb[16].mxu1 }
 0x5e5   : > { %v3239_v12 = vpop.f32.mrb[17].mxu1 }
 0x5e6   : > { %v1252_v14 = vpop.f32.mrb[18].mxu1 }
 0x5e7   : > { %v3240_v15 = vpop.f32.mrb[19].mxu1 }
 0x5ed   : > { %v1349_v16 = vpop.f32.mrb[20].mxu1 }
 0x5ee   : > { %v3251_v18 = vpop.f32.mrb[21].mxu1  ;;  %v1505_v19 = vsel %vm883_vm2, %v1349_v16, -inf }
 0x5ef   : > { %1506 = vmax.xlane.f32.xlu0 %v1505_v19  ;;  %v1352_v20 = vpop.f32.mrb[22].mxu1 }
 0x5f0   : > { %v3252_v21 = vpop.f32.mrb[23].mxu1 }
 0x5f5   : > { %v1449_v22 = vpop.f32.mrb[24].mxu1 }
 0x5f6   : > { %v3263_v23 = vpop.f32.mrb[25].mxu1  ;;  %v1511_v25 = vsel %vm883_vm2, %v1449_v22, -inf }
 0x5f7   : > { %1512 = vmax.xlane.f32.xlu0 %v1511_v25  ;;  %v1452_v27 = vpop.f32.mrb[26].mxu1 }
 0x5f8   : > { %v3264_v28 = vpop.f32.mrb[27].mxu1 }
 0x617   : > { %v1295_v30 = vpop.f32.mrb[20].mxu0 }
 0x618   : > { %v1302_v34 = vpack.c.bf16 %v1295_v30, %v1249_v11  ;;  %v3245_v36 = vpop.f32.mrb[21].mxu0 }
 0x619   : > { %v1298_v37 = vpop.f32.mrb[22].mxu0 }
 0x61a   : > { %1304 = vst.msk [vmem:[#allocation2 + $0x8] sm:$0xff] %vm883_vm2, %v1302_v34  ;;  %v3246_v39 = vpop.f32.mrb[23].mxu0 }
 0x61f   : > { %v1399_v44 = vpop.f32.mrb[24].mxu0 }
 0x620   : > { %v3257_v45 = vpop.f32.mrb[25].mxu0  ;;  %v1508_v46 = vsel %vm883_vm2, %v1399_v44, -inf }
 0x621   : > { %1509 = vmax.xlane.f32.xlu1 %v1508_v46  ;;  %v1402_v24 = vpop.f32.mrb[26].mxu0 }
 0x622   : > { %v3258_v29 = vpop.f32.mrb[27].mxu0 }
 0x627   : > { %v1499_v47 = vpop.f32.mrb[28].mxu0 }
 0x628   : > { %v3269_v48 = vpop.f32.mrb[29].mxu0  ;;  %v1514_v49 = vsel %vm883_vm2, %v1499_v47, -inf }
 0x629   : > { %v1502_v50 = vpop.f32.mrb[30].mxu0  ;;  %1515 = vmax.xlane.f32.xlu0 %v1514_v49 }
 0x62a   : > { %v3270_v51 = vpop.f32.mrb[31].mxu0 }
 0x632   : > { %1601 = vrot.lane.b32.xlu1 %v4344_v42, %s3900_s10 }
 0x636   : > { %1649 = vrot.lane.b32.xlu1 %v4388_v35, %s3900_s10 }
 0x63a   : > { %1697 = vrot.lane.b32.xlu1 %v4392_v38, %s3900_s10 }
 0x67c   : > { %v1507_v52 = vpop.xlane.xlu0 %1506 }
 0x67d   : > { %v1517_v53 = vsub.f32 %v1349_v16, %v1507_v52 }
 0x67f   : > { %v1521_v54 = vmul.f32 1.442695, %v1517_v53 }
 0x681   : > { %3561 = vpow2.f32 %v1521_v54 }
 0x684   : > { %v1513_v57 = vpop.xlane.xlu0 %1512 }
 0x685   : > { %v1519_v58 = vsub.f32 %v1449_v22, %v1513_v57 }
 0x687   : > { %v1525_v61 = vmul.f32 1.442695, %v1519_v58 }
 0x68b   : > { %v3562_v55 = vpop.eup %3561 }
 0x68c   : > { %v1529_v56 = vsel %vm883_vm2, %v3562_v55, 0.0 }
 0x68d   : > { %1530 = vadd.xlane.f32.xlu0 %v1529_v56 }
 0x6a3   : > { %1553 = vrot.lane.b32.xlu0 %v4339_v40, %s3900_s10  ;;  %s2850_s10 = sshll.u32 %s539_s30, 4  ;;  %s4662_s10 = int_to_ptr.vmem [resolvable:$true] %s2850_s10 }
 0x6ae   : > { %v1510_v59 = vpop.xlane.xlu1 %1509 }
 0x6af   : > { %v1518_v60 = vsub.f32 %v1399_v44, %v1510_v59 }
 0x6b1   : > { %v1523_v62 = vmul.f32 1.442695, %v1518_v60 }
 0x6b2   : > { %v1602_v63 = vpop.permute.xlu1 %1601 }
 0x6b3   : > { %3563 = vpow2.f32 %v1523_v62  ;;  %v1607_v0 = vsel %vm1119_vm3, %v1602_v63, 0 }
 0x6b4   : > { %3565 = vpow2.f32 %v1525_v61  ;;  %3278 = vmatpush3.bf16.msra.mxu0 %v1607_v0 }
 0x6b5   : > { %3289 = vmatprep.subr.bf16.mxu0 %v3898_v2 }
 0x6b6   : > { %v1516_v6 = vpop.xlane.xlu0 %1515  ;;  %v1650_v18 = vpop.permute.xlu1 %1649 }
 0x6b7   : > { %v1520_v7 = vsub.f32 %v1499_v47, %v1516_v6  ;;  %v1655_v20 = vsel %vm1119_vm3, %v1650_v18, 0 }
 0x6b9   : > { %v1527_v8 = vmul.f32 1.442695, %v1520_v7 }
 0x6ba   : > { %v1698_v21 = vpop.permute.xlu1 %1697 }
 0x6bb   : > { %3567 = vpow2.f32 %v1527_v8  ;;  %v1703_v37 = vsel %vm1119_vm3, %v1698_v21, 0 }
 0x6bd   : > { %v3564_v1 = vpop.eup %3563 }
 0x6be   : > { %v3566_v3 = vpop.eup %3565  ;;  %v1532_v4 = vsel %vm883_vm2, %v3564_v1, 0.0 }
 0x6bf   : > { %1533 = vadd.xlane.f32.xlu1 %v1532_v4  ;;  %v1535_v5 = vsel %vm883_vm2, %v3566_v3, 0.0 }
 0x6c2   : > { %1536 = vadd.xlane.f32.xlu0 %v1535_v5 }
 0x6c5   : > { %v3568_v9 = vpop.eup %3567 }
 0x6c6   : > { %v1538_v10 = vsel %vm883_vm2, %v3568_v9, 0.0 }
 0x6d0   : > { %1810 = vrot.lane.b32.xlu1 %v4306_v17, %s3901_s15 }
 0x6d8   : > { %1760 = vrot.lane.b32.xlu0 %v4304_v13, %s3901_s15 }
 0x6dc   : > { %1758 = vrot.lane.b32.xlu0 %v4320_v31, %s3901_s15 }
 0x6e0   : > { %1860 = vrot.lane.b32.xlu0 %v4315_v26, %s3901_s15 }
 0x6e4   : > { %1858 = vrot.lane.b32.xlu0 %v4342_v41, %s3901_s15 }
 0x6f4   : > { %1539 = vadd.xlane.f32.xlu1 %v1538_v10 }
 0x705   : > { %1808 = vrot.lane.b32.xlu1 %v4324_v33, %s3901_s15 }
 0x709   : > { %1910 = vrot.lane.b32.xlu1 %v4322_v32, %s3901_s15 }
 0x70d   : > { %1908 = vrot.lane.b32.xlu1 %v4346_v43, %s3901_s15 }
 0x71a   : > { %v1531_v11 = vpop.xlane.xlu0 %1530 }
 0x71b   : > { %3569 = vrcp.f32 %v1531_v11 }
 0x71e   : > { %v1554_v12 = vpop.permute.xlu0 %1553 }
 0x71f   : > { %v1559_v14 = vsel %vm1119_vm3, %v1554_v12, 0 }
 0x720   : > { %3272 = vmatpush3.bf16.msra.mxu1 %v1559_v14 }
 0x721   : > { %3283 = vmatprep.subr.bf16.mxu1 %v3898_v2 }
 0x725   : > { %v3570_v15 = vpop.eup %3569 }
 0x726   : > { %v1545_v16 = vmul.f32 %v3570_v15, %v3562_v55 }
 0x728   : > { %v1549_v19 = vpack.c.bf16 %v1545_v16, %v1545_v16 }
 0x72a   : > { %3274 = vmatmul.mubr.msk.bf16.vlgmr.msra.gmra.mrb[28].mxu1 %vm883_vm2, %v1549_v19 }
 0x72b   : > { %3284 = vmatpush3.bf16.msra.mxu1 %v1655_v20  ;;  %3285 = vmatprep.mubr.msk.bf16.mxu1 %vm3899_vm1, %v3898_v2 }
 0x72c   : > { %3295 = vmatprep.subr.bf16.mxu1 %v3898_v2 }
 0x74c   : > { %v1534_v22 = vpop.xlane.xlu1 %1533 }
 0x74d   : > { %3571 = vrcp.f32 %v1534_v22 }
 0x74f   : > { %v1537_v23 = vpop.xlane.xlu0 %1536 }
 0x750   : > { %3573 = vrcp.f32 %v1537_v23  ;;  %v1811_v47 = vpop.permute.xlu1 %1810 }
 0x751   : > { %v1816_v53 = vsel %vm883_vm2, %v1811_v47, 0 }
 0x753   : > { %v1761_v28 = vpop.permute.xlu0 %1760 }
 0x754   : > { %v1766_v45 = vsel %vm883_vm2, %v1761_v28, 0 }
 0x757   : > { %v3572_v25 = vpop.eup %3571  ;;  %v1759_v44 = vpop.permute.xlu0 %1758 }
 0x758   : > { %v1546_v27 = vmul.f32 %v3572_v25, %v3564_v1 }
 0x75a   : > { %v3574_v30 = vpop.eup %3573  ;;  %v1550_v34 = vpack.c.bf16 %v1546_v27, %v1546_v27 }
 0x75b   : > { %v1547_v36 = vmul.f32 %v3574_v30, %v3566_v3  ;;  %v1861_v46 = vpop.permute.xlu0 %1860 }
 0x75c   : > { %3280 = vmatmul.mubr.msk.bf16.vlgmr.msra.gmra.mrb[32].mxu0 %vm883_vm2, %v1550_v34  ;;  %v1866_v24 = vsel %vm883_vm2, %v1861_v46, 0 }
 0x75d   : > { %3290 = vmatpush3.bf16.msra.mxu0 %v1703_v37  ;;  %v1551_v39 = vpack.c.bf16 %v1547_v36, %v1547_v36  ;;  %3291 = vmatprep.mubr.msk.bf16.mxu0 %vm3899_vm1, %v3898_v2 }
 0x75e   : > { %3301 = vmatprep.subr.bf16.mxu0 %v3898_v2 }
 0x75f   : > { %3286 = vmatmul.mubr.msk.bf16.vlgmr.msra.gmra.mrb[32].mxu1 %vm883_vm2, %v1551_v39  ;;  %v1859_v29 = vpop.permute.xlu0 %1858 }
 0x760   : > { %3296 = vmatpush3.bf16.xpose.msra.mxu1 %v1766_v45  ;;  %3297 = vmatprep.mubr.msk.bf16.mxu1 %vm3899_vm1, %v3898_v2 }
 0x761   : > { %3307 = vmatprep.subr.bf16.mxu1 %v3898_v2 }
 0x767   : > { %3298 = vmatmul.mubr.msk.bf16.vlgmr.msra.gmra.mrb[36].mxu1 %vm883_vm2, %v1759_v44 }
 0x768   : > { %3308 = vmatpush3.bf16.xpose.msra.mxu1 %v1866_v24  ;;  %3309 = vmatprep.mubr.msk.bf16.mxu1 %vm3899_vm1, %v3898_v2 }
 0x769   : > { %3319 = vmatprep.subr.bf16.mxu1 %v3898_v2 }
 0x76f   : > { %3310 = vmatmul.mubr.msk.bf16.vlgmr.msra.gmra.mrb[40].mxu1 %vm883_vm2, %v1859_v29 }
 0x770   : > { %3321 = vmatprep.mubr.msk.bf16.mxu1 %vm3899_vm1, %v3898_v2 }
 0x781   : > { %v1540_v48 = vpop.xlane.xlu1 %1539 }
 0x782   : > { %3575 = vrcp.f32 %v1540_v48 }
 0x785   : > { %v1809_v52 = vpop.permute.xlu1 %1808 }
 0x789   : > { %v1911_v54 = vpop.permute.xlu1 %1910 }
 0x78a   : > { %v1916_v55 = vsel %vm883_vm2, %v1911_v54, 0 }
 0x78c   : > { %v3576_v49 = vpop.eup %3575 }
 0x78d   : > { %v1548_v50 = vmul.f32 %v3576_v49, %v3568_v9  ;;  %v1909_v56 = vpop.permute.xlu1 %1908 }
 0x78f   : > { %v1552_v51 = vpack.c.bf16 %v1548_v50, %v1548_v50 }
 0x791   : > { %3292 = vmatmul.mubr.msk.bf16.vlgmr.msra.gmra.mrb[36].mxu0 %vm883_vm2, %v1552_v51 }
 0x792   : > { %3302 = vmatpush3.bf16.xpose.msra.mxu0 %v1816_v53  ;;  %3303 = vmatprep.mubr.msk.bf16.mxu0 %vm3899_vm1, %v3898_v2 }
 0x793   : > { %3313 = vmatprep.subr.bf16.mxu0 %v3898_v2 }
 0x799   : > { %3304 = vmatmul.mubr.msk.bf16.vlgmr.msra.gmra.mrb[40].mxu0 %vm883_vm2, %v1809_v52 }
 0x79a   : > { %3314 = vmatpush3.bf16.xpose.msra.mxu0 %v1916_v55  ;;  %3315 = vmatprep.mubr.msk.bf16.mxu0 %vm3899_vm1, %v3898_v2 }
 0x79b   : > { %3325 = vmatprep.subr.bf16.mxu0 %v3898_v2 }
 0x7a1   : > { %3316 = vmatmul.mubr.msk.bf16.vlgmr.msra.gmra.mrb[44].mxu0 %vm883_vm2, %v1909_v56 }
 0x7a2   : > { %3327 = vmatprep.mubr.msk.bf16.mxu0 %vm3899_vm1, %v3898_v2 }
 0x7fd   : > { %v4506_v57 = vpop.f32.mrb[28].mxu1 }
 0x7fe   : > { %v3275_v58 = vpop.f32.mrb[29].mxu1 }
 0x7ff   : > { %v1598_v59 = vpop.f32.mrb[30].mxu1 }
 0x800   : > { %v3276_v60 = vpop.f32.mrb[31].mxu1 }
 0x82f   : > { %v4508_v61 = vpop.f32.mrb[32].mxu0 }
 0x830   : > { %v1745_v62 = vpack.c.bf16 %v4508_v61, %v4506_v57  ;;  %v3281_v63 = vpop.f32.mrb[33].mxu0 }
 0x831   : > { %v1646_v0 = vpop.f32.mrb[34].mxu0 }
 0x832   : > { %v4512_v1 = vpop.f32.mrb[32].mxu1  ;;  %v3282_v3 = vpop.f32.mrb[35].mxu0 }
 0x833   : > { %v3287_v4 = vpop.f32.mrb[33].mxu1 }
 0x834   : > { %v1694_v5 = vpop.f32.mrb[34].mxu1 }
 0x835   : > { %v3288_v6 = vpop.f32.mrb[35].mxu1 }
 0x83a   : > { %v1802_v7 = vpop.f32.mrb[36].mxu1 }
 0x83b   : > { %v3299_v8 = vpop.f32.mrb[37].mxu1  ;;  %v1958_v9 = vsel %vm883_vm2, %v1802_v7, -inf }
 0x83c   : > { %1959 = vmax.xlane.f32.xlu0 %v1958_v9  ;;  %v1805_v10 = vpop.f32.mrb[38].mxu1 }
 0x83d   : > { %v3300_v11 = vpop.f32.mrb[39].mxu1 }
 0x842   : > { %v1902_v12 = vpop.f32.mrb[40].mxu1 }
 0x843   : > { %v3311_v14 = vpop.f32.mrb[41].mxu1  ;;  %v1964_v15 = vsel %vm883_vm2, %v1902_v12, -inf }
 0x844   : > { %1965 = vmax.xlane.f32.xlu0 %v1964_v15  ;;  %v1905_v16 = vpop.f32.mrb[42].mxu1 }
 0x845   : > { %v3312_v18 = vpop.f32.mrb[43].mxu1 }
 0x864   : > { %v4516_v19 = vpop.f32.mrb[36].mxu0 }
 0x865   : > { %v1746_v20 = vpack.c.bf16 %v4516_v19, %v4512_v1  ;;  %v3293_v21 = vpop.f32.mrb[37].mxu0 }
 0x866   : > { %v1742_v22 = vpop.f32.mrb[38].mxu0 }
 0x867   : > { %v3294_v23 = vpop.f32.mrb[39].mxu0 }
 0x86c   : > { %v1852_v25 = vpop.f32.mrb[40].mxu0 }
 0x86d   : > { %v3305_v27 = vpop.f32.mrb[41].mxu0  ;;  %v1961_v28 = vsel %vm883_vm2, %v1852_v25, -inf }
 0x86e   : > { %1962 = vmax.xlane.f32.xlu1 %v1961_v28  ;;  %v1855_v30 = vpop.f32.mrb[42].mxu0 }
 0x86f   : > { %v3306_v34 = vpop.f32.mrb[43].mxu0 }
 0x874   : > { %v1952_v36 = vpop.f32.mrb[44].mxu0 }
 0x875   : > { %v3317_v37 = vpop.f32.mrb[45].mxu0  ;;  %v1967_v39 = vsel %vm883_vm2, %v1952_v36, -inf }
 0x876   : > { %v1955_v44 = vpop.f32.mrb[46].mxu0  ;;  %1968 = vmax.xlane.f32.xlu0 %v1967_v39 }
 0x877   : > { %v3318_v45 = vpop.f32.mrb[47].mxu0 }
 0x87f   : > { %2054 = vrot.lane.b32.xlu1 %v4344_v42, %s3901_s15 }
 0x883   : > { %2102 = vrot.lane.b32.xlu1 %v4388_v35, %s3901_s15 }
 0x887   : > { %2150 = vrot.lane.b32.xlu1 %v4392_v38, %s3901_s15 }
 0x8c9   : > { %v1960_v46 = vpop.xlane.xlu0 %1959 }
 0x8ca   : > { %v1970_v24 = vsub.f32 %v1802_v7, %v1960_v46 }
 0x8cc   : > { %v1974_v29 = vmul.f32 1.442695, %v1970_v24 }
 0x8ce   : > { %3577 = vpow2.f32 %v1974_v29 }
 0x8d1   : > { %v1966_v49 = vpop.xlane.xlu0 %1965 }
 0x8d2   : > { %v1972_v50 = vsub.f32 %v1902_v12, %v1966_v49 }
 0x8d4   : > { %v1978_v53 = vmul.f32 1.442695, %v1972_v50 }
 0x8d8   : > { %v3578_v47 = vpop.eup %3577 }
 0x8d9   : > { %v1982_v48 = vsel %vm883_vm2, %v3578_v47, 0.0 }
 0x8da   : > { %1983 = vadd.xlane.f32.xlu0 %v1982_v48 }
 0x8f0   : > { %2006 = vrot.lane.b32.xlu0 %v4339_v40, %s3901_s15  ;;  %s3090_s15 = sshll.u32 %s3999_s14, 9  ;;  %s2837_s14 = scalar_lea.sflag [#allocation5], %s4244_s12 }
 0x8fb   : > { %v1963_v51 = vpop.xlane.xlu1 %1962 }
 0x8fc   : > { %v1971_v52 = vsub.f32 %v1852_v25, %v1963_v51 }
 0x8fe   : > { %v1976_v54 = vmul.f32 1.442695, %v1971_v52 }
 0x8ff   : > { %v2055_v55 = vpop.permute.xlu1 %2054 }
 0x900   : > { %3579 = vpow2.f32 %v1976_v54  ;;  %v2060_v56 = vsel %vm1119_vm3, %v2055_v55, 0 }
 0x901   : > { %3581 = vpow2.f32 %v1978_v53  ;;  %3326 = vmatpush3.bf16.msra.mxu0 %v2060_v56 }
 0x902   : > { %3337 = vmatprep.subr.bf16.mxu0 %v3898_v2 }
 0x903   : > { %v1969_v0 = vpop.xlane.xlu0 %1968  ;;  %v2103_v7 = vpop.permute.xlu1 %2102 }
 0x904   : > { %v1973_v3 = vsub.f32 %v1952_v36, %v1969_v0 }
 0x906   : > { %v1980_v4 = vmul.f32 1.442695, %v1973_v3 }
 0x908   : > { %3583 = vpow2.f32 %v1980_v4 }
 0x90a   : > { %v3580_v58 = vpop.eup %3579 }
 0x90b   : > { %v3582_v59 = vpop.eup %3581  ;;  %v1985_v60 = vsel %vm883_vm2, %v3580_v58, 0.0 }
 0x90c   : > { %1986 = vadd.xlane.f32.xlu1 %v1985_v60  ;;  %v1988_v63 = vsel %vm883_vm2, %v3582_v59, 0.0 }
 0x90f   : > { %1989 = vadd.xlane.f32.xlu0 %v1988_v63 }
 0x912   : > { %v3584_v5 = vpop.eup %3583 }
 0x913   : > { %v1991_v6 = vsel %vm883_vm2, %v3584_v5, 0.0 }
 0x91d   : > { %2263 = vrot.lane.b32.xlu1 %v4306_v17, %s3902_s13 }
 0x925   : > { %2213 = vrot.lane.b32.xlu0 %v4304_v13, %s3902_s13 }
 0x929   : > { %2211 = vrot.lane.b32.xlu0 %v4320_v31, %s3902_s13 }
 0x92d   : > { %2313 = vrot.lane.b32.xlu0 %v4315_v26, %s3902_s13 }
 0x931   : > { %2311 = vrot.lane.b32.xlu0 %v4342_v41, %s3902_s13 }
 0x941   : > { %1992 = vadd.xlane.f32.xlu1 %v1991_v6 }
 0x952   : > { %2261 = vrot.lane.b32.xlu1 %v4324_v33, %s3902_s13  ;;  %v2108_v33 = vsel %vm1119_vm3, %v2103_v7, 0 }
 0x956   : > { %2363 = vrot.lane.b32.xlu1 %v4322_v32, %s3902_s13  ;;  %v2151_v32 = vpop.permute.xlu1 %2150 }
 0x957   : > { %v2156_v18 = vsel %vm1119_vm3, %v2151_v32, 0 }
 0x95a   : > { %2361 = vrot.lane.b32.xlu1 %v4346_v43, %s3902_s13 }
 0x967   : > { %v1984_v13 = vpop.xlane.xlu0 %1983 }
 0x968   : > { %3585 = vrcp.f32 %v1984_v13 }
 0x96b   : > { %v2007_v17 = vpop.permute.xlu0 %2006 }
 0x96c   : > { %v2012_v26 = vsel %vm1119_vm3, %v2007_v17, 0 }
 0x96d   : > { %3320 = vmatpush3.bf16.msra.mxu1 %v2012_v26 }
 0x96e   : > { %3331 = vmatprep.subr.bf16.mxu1 %v3898_v2 }
 0x972   : > { %v3586_v31 = vpop.eup %3585 }
 0x973   : > { %v1998_v41 = vmul.f32 %v3586_v31, %v3578_v47 }
 0x975   : > { %v2002_v8 = vpack.c.bf16 %v1998_v41, %v1998_v41 }
 0x977   : > { %3322 = vmatmul.mubr.msk.bf16.vlgmr.msra.gmra.mrb[44].mxu1 %vm883_vm2, %v2002_v8 }
 0x978   : > { %3332 = vmatpush3.bf16.msra.mxu1 %v2108_v33  ;;  %3333 = vmatprep.mubr.msk.bf16.mxu1 %vm3899_vm1, %v3898_v2 }
 0x979   : > { %3343 = vmatprep.subr.bf16.mxu1 %v3898_v2 }
 0x999   : > { %v1987_v43 = vpop.xlane.xlu1 %1986 }
 0x99a   : > { %3587 = vrcp.f32 %v1987_v43 }
 0x99c   : > { %v1990_v9 = vpop.xlane.xlu0 %1989 }
 0x99d   : > { %3589 = vrcp.f32 %v1990_v9  ;;  %v2264_v30 = vpop.permute.xlu1 %2263 }
 0x99e   : > { %v2269_v45 = vsel %vm883_vm2, %v2264_v30, 0 }
 0x9a0   : > { %v2214_v12 = vpop.permute.xlu0 %2213 }
 0x9a1   : > { %v2219_v23 = vsel %vm883_vm2, %v2214_v12, 0 }
 0x9a4   : > { %v3588_v10 = vpop.eup %3587  ;;  %v2212_v22 = vpop.permute.xlu0 %2211 }
 0x9a5   : > { %v1999_v11 = vmul.f32 %v3588_v10, %v3580_v58 }
 0x9a7   : > { %v3590_v14 = vpop.eup %3589  ;;  %v2003_v15 = vpack.c.bf16 %v1999_v11, %v1999_v11 }
 0x9a8   : > { %v2000_v16 = vmul.f32 %v3590_v14, %v3582_v59  ;;  %v2314_v25 = vpop.permute.xlu0 %2313 }
 0x9a9   : > { %3328 = vmatmul.mubr.msk.bf16.vlgmr.msra.gmra.mrb[48].mxu0 %vm883_vm2, %v2003_v15  ;;  %v2319_v27 = vsel %vm883_vm2, %v2314_v25, 0 }
 0x9aa   : > { %3338 = vmatpush3.bf16.msra.mxu0 %v2156_v18  ;;  %v2004_v21 = vpack.c.bf16 %v2000_v16, %v2000_v16  ;;  %3339 = vmatprep.mubr.msk.bf16.mxu0 %vm3899_vm1, %v3898_v2 }
 0x9ab   : > { %3349 = vmatprep.subr.bf16.mxu0 %v3898_v2 }
 0x9ac   : > { %3334 = vmatmul.mubr.msk.bf16.vlgmr.msra.gmra.mrb[48].mxu1 %vm883_vm2, %v2004_v21  ;;  %v2312_v28 = vpop.permute.xlu0 %2311 }
 0x9ad   : > { %3344 = vmatpush3.bf16.xpose.msra.mxu1 %v2219_v23  ;;  %3345 = vmatprep.mubr.msk.bf16.mxu1 %vm3899_vm1, %v3898_v2 }
 0x9ae   : > { %3355 = vmatprep.subr.bf16.mxu1 %v3898_v2 }
 0x9b4   : > { %3346 = vmatmul.mubr.msk.bf16.vlgmr.msra.gmra.mrb[52].mxu1 %vm883_vm2, %v2212_v22 }
 0x9b5   : > { %3356 = vmatpush3.bf16.xpose.msra.mxu1 %v2319_v27  ;;  %3357 = vmatprep.mubr.msk.bf16.mxu1 %vm3899_vm1, %v3898_v2 }
 0x9b6   : > { %3367 = vmatprep.subr.bf16.mxu1 %v3898_v2 }
 0x9bc   : > { %3358 = vmatmul.mubr.msk.bf16.vlgmr.msra.gmra.mrb[56].mxu1 %vm883_vm2, %v2312_v28 }
 0x9bd   : > { %3369 = vmatprep.mubr.msk.bf16.mxu1 %vm3899_vm1, %v3898_v2 }
 0x9ce   : > { %v1993_v34 = vpop.xlane.xlu1 %1992 }
 0x9cf   : > { %3591 = vrcp.f32 %v1993_v34 }
 0x9d2   : > { %v2262_v44 = vpop.permute.xlu1 %2261 }
 0x9d6   : > { %v2364_v46 = vpop.permute.xlu1 %2363 }
 0x9d7   : > { %v2369_v24 = vsel %vm883_vm2, %v2364_v46, 0 }
 0x9d9   : > { %v3592_v36 = vpop.eup %3591 }
 0x9da   : > { %v2001_v37 = vmul.f32 %v3592_v36, %v3584_v5  ;;  %v2362_v29 = vpop.permute.xlu1 %2361 }
 0x9dc   : > { %v2005_v39 = vpack.c.bf16 %v2001_v37, %v2001_v37 }
 0x9de   : > { %3340 = vmatmul.mubr.msk.bf16.vlgmr.msra.gmra.mrb[52].mxu0 %vm883_vm2, %v2005_v39 }
 0x9df   : > { %3350 = vmatpush3.bf16.xpose.msra.mxu0 %v2269_v45  ;;  %3351 = vmatprep.mubr.msk.bf16.mxu0 %vm3899_vm1, %v3898_v2 }
 0x9e0   : > { %3361 = vmatprep.subr.bf16.mxu0 %v3898_v2 }
 0x9e6   : > { %3352 = vmatmul.mubr.msk.bf16.vlgmr.msra.gmra.mrb[56].mxu0 %vm883_vm2, %v2262_v44 }
 0x9e7   : > { %3362 = vmatpush3.bf16.xpose.msra.mxu0 %v2369_v24  ;;  %3363 = vmatprep.mubr.msk.bf16.mxu0 %vm3899_vm1, %v3898_v2 }
 0x9e8   : > { %3373 = vmatprep.subr.bf16.mxu0 %v3898_v2 }
 0x9ee   : > { %3364 = vmatmul.mubr.msk.bf16.vlgmr.msra.gmra.mrb[60].mxu0 %vm883_vm2, %v2362_v29 }
 0x9ef   : > { %3375 = vmatprep.mubr.msk.bf16.mxu0 %vm3899_vm1, %v3898_v2 }
 0xa4a   : > { %v4590_v47 = vpop.f32.mrb[44].mxu1 }
 0xa4b   : > { %v3323_v48 = vpop.f32.mrb[45].mxu1 }
 0xa4c   : > { %v2051_v49 = vpop.f32.mrb[46].mxu1 }
 0xa4d   : > { %v3324_v50 = vpop.f32.mrb[47].mxu1 }
 0xa7c   : > { %v2096_v51 = vpop.f32.mrb[48].mxu0 }
 0xa7d   : > { %v2198_v52 = vpack.c.bf16 %v2096_v51, %v4590_v47  ;;  %v3329_v53 = vpop.f32.mrb[49].mxu0 }
 0xa7e   : > { %v2099_v54 = vpop.f32.mrb[50].mxu0 }
 0xa7f   : > { %v4593_v55 = vpop.f32.mrb[48].mxu1  ;;  %v3330_v56 = vpop.f32.mrb[51].mxu0 }
 0xa80   : > { %v3335_v58 = vpop.f32.mrb[49].mxu1 }
 0xa81   : > { %v2147_v59 = vpop.f32.mrb[50].mxu1 }
 0xa82   : > { %v3336_v60 = vpop.f32.mrb[51].mxu1 }
 0xa87   : > { %v2255_v63 = vpop.f32.mrb[52].mxu1 }
 0xa88   : > { %v3347_v0 = vpop.f32.mrb[53].mxu1  ;;  %v2411_v3 = vsel %vm883_vm2, %v2255_v63, -inf }
 0xa89   : > { %2412 = vmax.xlane.f32.xlu0 %v2411_v3  ;;  %v2258_v4 = vpop.f32.mrb[54].mxu1 }
 0xa8a   : > { %v3348_v5 = vpop.f32.mrb[55].mxu1 }
 0xa8f   : > { %v2355_v6 = vpop.f32.mrb[56].mxu1 }
 0xa90   : > { %v3359_v13 = vpop.f32.mrb[57].mxu1  ;;  %v2417_v17 = vsel %vm883_vm2, %v2355_v6, -inf }
 0xa91   : > { %2418 = vmax.xlane.f32.xlu0 %v2417_v17  ;;  %v2358_v26 = vpop.f32.mrb[58].mxu1 }
 0xa92   : > { %v3360_v31 = vpop.f32.mrb[59].mxu1 }
 0xab1   : > { %v2192_v41 = vpop.f32.mrb[52].mxu0 }
 0xab2   : > { %v2199_v7 = vpack.c.bf16 %v2192_v41, %v4593_v55  ;;  %v3341_v8 = vpop.f32.mrb[53].mxu0 }
 0xab3   : > { %v2195_v33 = vpop.f32.mrb[54].mxu0 }
 0xab4   : > { %v3342_v32 = vpop.f32.mrb[55].mxu0 }
 0xab9   : > { %v2305_v43 = vpop.f32.mrb[56].mxu0 }
 0xaba   : > { %v3353_v9 = vpop.f32.mrb[57].mxu0  ;;  %v2414_v10 = vsel %vm883_vm2, %v2305_v43, -inf }
 0xabb   : > { %2415 = vmax.xlane.f32.xlu1 %v2414_v10  ;;  %v2308_v11 = vpop.f32.mrb[58].mxu0 }
 0xabc   : > { %v3354_v12 = vpop.f32.mrb[59].mxu0 }
 0xac1   : > { %v2405_v14 = vpop.f32.mrb[60].mxu0 }
 0xac2   : > { %v3365_v15 = vpop.f32.mrb[61].mxu0  ;;  %v2420_v16 = vsel %vm883_vm2, %v2405_v14, -inf }
 0xac3   : > { %v2408_v18 = vpop.f32.mrb[62].mxu0  ;;  %2421 = vmax.xlane.f32.xlu0 %v2420_v16  ;;  %v3533_v16 = vld [vmem:[%s4760_s20] sm:$0xff]  }
 0xac4   : > { %v3366_v21 = vpop.f32.mrb[63].mxu0  ;;  %v3534_v18 = vld [vmem:[%s4760_s20 + $0x8] sm:$0xff]  }
 0xb16   : > { %v2413_v22 = vpop.xlane.xlu0 %2412 }
 0xb17   : > { %v2423_v23 = vsub.f32 %v2255_v63, %v2413_v22 }
 0xb19   : > { %v2427_v25 = vmul.f32 1.442695, %v2423_v23 }
 0xb1b   : > { %3593 = vpow2.f32 %v2427_v25 }
 0xb1e   : > { %v2419_v27 = vpop.xlane.xlu0 %2418 }
 0xb1f   : > { %v2425_v28 = vsub.f32 %v2355_v6, %v2419_v27 }
 0xb21   : > { %v2431_v30 = vmul.f32 1.442695, %v2425_v28 }
 0xb23   : > { %3595 = vpow2.f32 %v2431_v30 }
 0xb25   : > { %v3594_v34 = vpop.eup %3593 }
 0xb26   : > { %v2435_v36 = vsel %vm883_vm2, %v3594_v34, 0.0 }
 0xb27   : > { %2436 = vadd.xlane.f32.xlu0 %v2435_v36 }
 0xb2d   : > { %v3596_v37 = vpop.eup %3595 }
 0xb2e   : > { %v2441_v39 = vsel %vm883_vm2, %v3596_v37, 0.0 }
 0xb2f   : > { %2442 = vadd.xlane.f32.xlu0 %v2441_v39  ;;  %v3536_v39 = vld [vmem:[#allocation14 + $0x8] sm:$0xff]  }
 0xb45   : > { %2459 = vrot.lane.b32.xlu0 %v4339_v40, %s3902_s13 }
 0xb48   : > { %v2416_v44 = vpop.xlane.xlu1 %2415 }
 0xb49   : > { %v2424_v45 = vsub.f32 %v2305_v43, %v2416_v44  ;;  %1749 = vrot.lane.b32.xlu0 %v1745_v62, %s4736_s9 }
 0xb4b   : > { %v2429_v46 = vmul.f32 1.442695, %v2424_v45 }
 0xb4d   : > { %3597 = vpow2.f32 %v2429_v46  ;;  %2202 = vrot.lane.b32.xlu0 %v2198_v52, %s3904_s18 }
 0xb50   : > { %v2422_v40 = vpop.xlane.xlu0 %2421 }
 0xb51   : > { %v2426_v47 = vsub.f32 %v2405_v14, %v2422_v40 }
 0xb53   : > { %v2433_v48 = vmul.f32 1.442695, %v2426_v47 }
 0xb55   : > { %3599 = vpow2.f32 %v2433_v48 }
 0xb57   : > { %v3598_v24 = vpop.eup %3597 }
 0xb58   : > { %v2438_v29 = vsel %vm883_vm2, %v3598_v24, 0.0 }
 0xb59   : > { %2439 = vadd.xlane.f32.xlu1 %v2438_v29 }
 0xb5f   : > { %v3600_v57 = vpop.eup %3599 }
 0xb60   : > { %v2444_v61 = vsel %vm883_vm2, %v3600_v57, 0.0 }
 0xb6a   : > { %2507 = vrot.lane.b32.xlu1 %v4344_v42, %s3902_s13 }
 0xb6e   : > { %2555 = vrot.lane.b32.xlu1 %v4388_v35, %s3902_s13 }
 0xb92   : > { %2445 = vadd.xlane.f32.xlu1 %v2444_v61 }
 0xba3   : > { %2603 = vrot.lane.b32.xlu1 %v4392_v38, %s3902_s13 }
 0xba7   : > { %1751 = vrot.lane.b32.xlu1 %v1746_v20, %s4736_s9 }
 0xbab   : > { %2204 = vrot.lane.b32.xlu1 %v2199_v7, %s3904_s18  ;;  %s4761_s18 = sld [smem:[#allocation23_spill]] }
 0xbb1   : > { %v3062_v45 = vld [vmem:[%s4761_s18] ss:$0 sm:$0xff]  ;;  %s4763_s18 = sld [smem:[#allocation25_spill]] }
 0xbb4   : > { %v2437_v42 = vpop.xlane.xlu0 %2436 }
 0xbb5   : > { %3601 = vrcp.f32 %v2437_v42 }
 0xbbc   : > { %v2443_v35 = vpop.xlane.xlu0 %2442 }
 0xbbd   : > { %3603 = vrcp.f32 %v2443_v35  ;;  %v3067_v35 = vld [vmem:[%s4762_s29] ss:$0 sm:$0xff]  ;;  %s3811_s29 = sshll.u32 %s3906_s19, 4  ;;  %s3812_s29 = int_to_ptr.vmem [resolvable:$false] %s3811_s29 }
 0xbbe   : > { %s3813_s9 = scalar_lea.vmem %s3812_s29, 1024  ;;  %p3814_p1 = scmp.lt.s32.totalorder %s4662_s10, %s3812_s29 }
 0xbbf   : > { %v3602_v62 = vpop.eup %3601 }
 0xbc0   : > { %v2451_v49 = vmul.f32 %v3602_v62, %v3594_v34  ;;  %v2460_v50 = vpop.permute.xlu0 %2459 }
 0xbc1   : > { %v2465_v51 = vsel %vm1119_vm3, %v2460_v50, 0 }
 0xbc2   : > { %3368 = vmatpush3.bf16.msra.mxu1 %v2465_v51  ;;  %v2455_v52 = vpack.c.bf16 %v2451_v49, %v2451_v49  ;;  %v2826_v49 = vld [vmem:[%s4250_s2 + $0x10] sm:$0xff] }
 0xbc3   : > { %3379 = vmatprep.subr.bf16.mxu1 %v3898_v2 }
 0xbc4   : > { %v1750_v38 = vpop.permute.xlu0 %1749 }
 0xbc5   : > { %1756 = vst.msk [vmem:[#allocation2] sm:$0xff] %vm1755_vm4, %v1750_v38  ;;  %3370 = vmatmul.mubr.msk.bf16.vlgmr.msra.gmra.mrb[60].mxu1 %vm883_vm2, %v2455_v52  ;;  %v2824_v52 = vld [vmem:[%s4250_s2] sm:$0xff] }
 0xbc6   : > { %3381 = vmatprep.mubr.msk.bf16.mxu1 %vm3899_vm1, %v3898_v2 }
 0xbc7   : > { %v3604_v20 = vpop.eup %3603 }
 0xbc8   : > { %v2203_v1 = vpop.permute.xlu0 %2202  ;;  %v2453_v55 = vmul.f32 %v3604_v20, %v3596_v37  ;;  %v3535_v37 = vld [vmem:[#allocation14] sm:$0xff]  }
 0xbc9   : > { %2209 = vst.msk [vmem:[#allocation2] sm:$0xff] %vm2208_vm5, %v2203_v1 }
 0xbca   : > { %v2457_v60 = vpack.c.bf16 %v2453_v55, %v2453_v55  ;;  %v2825_v55 = vld [vmem:[%s4250_s2 + $0x8] sm:$0xff] }
 0xbe6   : > { %v2440_v19 = vpop.xlane.xlu1 %2439 }
 0xbe7   : > { %3605 = vrcp.f32 %v2440_v19  ;;  %v2827_v19 = vld [vmem:[%s4250_s2 + $0x18] sm:$0xff]  ;;  %s3807_s2 = scalar_lea.vmem %s4662_s10, 512 }
 0xbe8   : > { %p3808_p6 = scmp.ne.s32.totalorder %s4662_s10, %s3807_s2  ;;  %p3815_p3 = scmp.lt.s32.totalorder %s3813_s9, %s3807_s2 }
 0xbea   : > { %v2508_v53 = vpop.permute.xlu1 %2507  ;;  %p3809_p12 = pnand %p3808_p6, %p4764_p9  ;;  %p3816_p2 = por %p3815_p3, %p3814_p1 }
 0xbeb   : > { %v2513_v54 = vsel %vm1119_vm3, %v2508_v53, 0 }
 0xbec   : > { %3374 = vmatpush3.bf16.msra.mxu0 %v2513_v54  ;;  %p3810_p13 = pneg %p3809_p12 }
 0xbed   : > { %3385 = vmatprep.subr.bf16.mxu0 %v3898_v2 }
 0xbee   : > { %v2556_v56 = vpop.permute.xlu1 %2555  ;;  %p3817_p8 = pnand %p3816_p2, %p3810_p13 }
 0xbef   : > { %v2561_v58 = vsel %vm1119_vm3, %v2556_v56, 0 }
 0xbf0   : > { %3380 = vmatpush3.bf16.msra.mxu1 %v2561_v58 }
 0xbf1   : > { %v3606_v59 = vpop.eup %3605  ;;  %3391 = vmatprep.subr.bf16.mxu1 %v3533_v16 }
 0xbf2   : > { %v2452_v63 = vmul.f32 %v3606_v59, %v3598_v24 }
 0xbf3   : > { %3382 = vmatmul.mubr.msk.bf16.vlgmr.msra.gmra.mrb[64].mxu1 %vm883_vm2, %v2457_v60 }
 0xbf4   : > { %v2456_v0 = vpack.c.bf16 %v2452_v63, %v2452_v63  ;;  %3392 = vmatpush3.bf16.msra.mxu1 %v3533_v16 }
 0xbf5   : > { %3393 = vmatprep.subr.bf16.mxu1 %v3534_v18 }
 0xbf6   : > { %3376 = vmatmul.mubr.msk.bf16.vlgmr.msra.gmra.mrb[64].mxu0 %vm883_vm2, %v2456_v0 }
 0xbf7   : > { %3387 = vmatprep.mubr.msk.bf16.mxu0 %vm3899_vm1, %v3898_v2 }
 0xbf8   : > { %3394 = vmatpush3.bf16.msra.mxu1 %v3534_v18 }
 0xc1f   : > { %v2446_v3 = vpop.xlane.xlu1 %2445 }
 0xc20   : > { %3607 = vrcp.f32 %v2446_v3 }
 0xc23   : > { %v2604_v4 = vpop.permute.xlu1 %2603 }
 0xc24   : > { %v2609_v5 = vsel %vm1119_vm3, %v2604_v4, 0 }
 0xc25   : > { %3386 = vmatpush3.bf16.msra.mxu0 %v2609_v5 }
 0xc26   : > { %3399 = vmatprep.subr.bf16.mxu0 %v3535_v37 }
 0xc27   : > { %v1752_v6 = vpop.permute.xlu1 %1751 }
 0xc28   : > { %1757 = vst.msk [vmem:[#allocation2 + $0x8] sm:$0xff] %vm1755_vm4, %v1752_v6 }
 0xc2a   : > { %v3608_v13 = vpop.eup %3607 }
 0xc2b   : > { %v2454_v17 = vmul.f32 %v3608_v13, %v3600_v57  ;;  %v2205_v26 = vpop.permute.xlu1 %2204 }
 0xc2c   : > { %2210 = vst.msk [vmem:[#allocation2 + $0x8] sm:$0xff] %vm2208_vm5, %v2205_v26 }
 0xc2d   : > { %v2458_v31 = vpack.c.bf16 %v2454_v17, %v2454_v17 }
 0xc2f   : > { %3388 = vmatmul.mubr.msk.bf16.vlgmr.msra.gmra.mrb[68].mxu0 %vm883_vm2, %v2458_v31 }
 0xc30   : > { %3400 = vmatpush3.bf16.msra.mxu0 %v3535_v37 }
 0xc31   : > { %3401 = vmatprep.subr.bf16.mxu0 %v3536_v39 }
 0xc34   : > { %3402 = vmatpush3.bf16.msra.mxu0 %v3536_v39 }
 0xc98   : > { %v2501_v41 = vpop.f32.mrb[60].mxu1 }
 0xc99   : > { %v3371_v7 = vpop.f32.mrb[61].mxu1 }
 0xc9a   : > { %v2504_v2 = vpop.f32.mrb[62].mxu1 }
 0xc9b   : > { %v3372_v8 = vpop.f32.mrb[63].mxu1 }
 0xcc6   : > { %v2597_v33 = vpop.f32.mrb[64].mxu1 }
 0xcc7   : > { %v3383_v32 = vpop.f32.mrb[65].mxu1 }
 0xcc8   : > { %v2600_v43 = vpop.f32.mrb[66].mxu1 }
 0xcc9   : > { %v2549_v9 = vpop.f32.mrb[64].mxu0  ;;  %v3384_v10 = vpop.f32.mrb[67].mxu1 }
 0xcca   : > { %v2651_v11 = vpack.c.bf16 %v2549_v9, %v2501_v41  ;;  %v3377_v12 = vpop.f32.mrb[65].mxu0 }
 0xccb   : > { %v2552_v14 = vpop.f32.mrb[66].mxu0 }
 0xccc   : > { %v3378_v15 = vpop.f32.mrb[67].mxu0  ;;  %2655 = vrot.lane.b32.xlu0 %v2651_v11, %s3905_s24 }
 0xd02   : > { %v2645_v21 = vpop.f32.mrb[68].mxu0 }
 0xd03   : > { %v2652_v22 = vpack.c.bf16 %v2645_v21, %v2597_v33  ;;  %v3389_v23 = vpop.f32.mrb[69].mxu0 }
 0xd04   : > { %v2648_v25 = vpop.f32.mrb[70].mxu0 }
 0xd05   : > { %v3390_v27 = vpop.f32.mrb[71].mxu0  ;;  %2657 = vrot.lane.b32.xlu1 %v2652_v22, %s3905_s24  ;;  %s4668_s24 = scalar_lea.hbm %s4763_s18, %s3090_s15 }
 0xd3e   : > { %v2656_v28 = vpop.permute.xlu0 %2655 }
 0xd3f   : > { %2662 = vst.msk [vmem:[#allocation2] sm:$0xff] %vm2661_vm6, %v2656_v28 }
 0xd46   : > { %v2664_v30 = vld [vmem:[#allocation2] sm:$0xff] }
 0xd47   : > { %3395 = vmatprep.mubr.msk.bf16.mxu1 %vm547_vm0, %v2664_v30 }
 0xd77   : > { %v2658_v34 = vpop.permute.xlu1 %2657 }
 0xd78   : > { %2663 = vst.msk [vmem:[#allocation2 + $0x8] sm:$0xff] %vm2661_vm6, %v2658_v34 }
 0xd7f   : > { %v2665_v36 = vld [vmem:[#allocation2 + $0x8] sm:$0xff] }
 0xd80   : > { %3396 = vmatmul.mubr.msk.bf16.vlgmr.msra.gmra.mrb[68].mxu1 %vm547_vm0, %v2665_v36 }
 0xe53   : > { %v3397_v44 = vpop.f32.mrb[68].mxu1 }
 0xe54   : > { %v2729_v46 = vpop.f32.mrb[69].mxu1  ;;  %v2738_v29 = vadd.f32 %v3397_v44, %v3062_v45 }
 0xe55   : > { %v3398_v24 = vpop.f32.mrb[70].mxu1  ;;  %v2730_v48 = vadd.f32 %v3062_v45, %v2729_v46 }
 0xe56   : > { %v2741_v40 = vadd.f32 %v3398_v24, %v3062_v45  ;;  %v2732_v47 = vpop.f32.mrb[71].mxu1 }
 0xe57   : > { %v2733_v57 = vadd.f32 %v3062_v45, %v2732_v47 }
 0xe58   : > { %v2745_v61 = vpack.c.bf16 %v2741_v40, %v2738_v29 }
 0xe59   : > { %v2744_v42 = vpack.c.bf16 %v2733_v57, %v2730_v48 }
 0xe5b   : > { %3403 = vmatprep.mubr.msk.bf16.mxu0 %vm547_vm0, %v2744_v42 }
 0xe5c   : > { %3404 = vmatmul.mubr.msk.bf16.vlgmr.msra.gmra.mrb[72].mxu0 %vm547_vm0, %v2745_v61 }
 0xf2f   : > { %v3405_v62 = vpop.f32.mrb[72].mxu0 }
 0xf30   : > { %v2818_v50 = vadd.f32 %v3405_v62, %v3067_v35  ;;  %v2809_v51 = vpop.f32.mrb[73].mxu0 }
 0xf31   : > { %v2810_v38 = vadd.f32 %v3067_v35, %v2809_v51  ;;  %v3406_v1 = vpop.f32.mrb[74].mxu0 }
 0xf32   : > { %v2830_v20 = vadd.f32 %v2826_v49, %v2818_v50  ;;  %v2821_v53 = vadd.f32 %v3406_v1, %v3067_v35  ;;  %v2812_v54 = vpop.f32.mrb[75].mxu0 }
 0xf33   : > { %v2828_v56 = vadd.f32 %v2824_v52, %v2810_v38  ;;  %v2813_v58 = vadd.f32 %v3067_v35, %v2812_v54 }
 0xf34   : > { %2834 = vst.msk [vmem:[%s539_s30 + $0x10] sm:$0xff] %vm547_vm0, %v2830_v20  ;;  %v2831_v59 = vadd.f32 %v2827_v19, %v2821_v53 }
 0xf35   : > { %2832 = vst.msk [vmem:[%s539_s30] sm:$0xff] %vm547_vm0, %v2828_v56  ;;  %v2829_v60 = vadd.f32 %v2825_v55, %v2813_v58 }
 0xf36   : > { %2835 = vst.msk [vmem:[%s539_s30 + $0x18] sm:$0xff] %vm547_vm0, %v2831_v59 }
 0xf37   : > { %2833 = vst.msk [vmem:[%s539_s30 + $0x8] sm:$0xff] %vm547_vm0, %v2829_v60 }
 0xf38   : > { %3820 = shalt.err (!%p3817_p8)
}
 0xf39   : > { %s3821_s30 = scalar_lea.hbm %s4668_s24, 512  ;;  %s3825_s13 = scalar_lea.hbm %s4763_s18, 1024 }
 0xf3a   : > { %p3822_p4 = scmp.ne.s32.totalorder %s4668_s24, %s3821_s30  ;;  %p3826_p0 = scmp.lt.u32.totalorder %s4668_s24, %s4763_s18 }
 0xf3b   : > { %p3827_p5 = scmp.lt.u32.totalorder %s3825_s13, %s3821_s30  ;;  %p3829_p6 = scmp.lt.u32.totalorder %s3821_s30, %s4668_s24 }
 0xf3c   : > { %p3823_p10 = pnand %p3822_p4, %p4764_p9 }
 0xf3d   : > { %p3828_p7 = por %p3827_p5, %p3826_p0 }
 0xf3e   : > { %p3824_p11 = pneg %p3823_p10 }
 0xf3f   : > { %p3830_p12 = por %p3829_p6, %p3828_p7 }
 0xf41   : > { %p3831_p13 = pnand %p3830_p12, %p3824_p11 }
 0xf43   : > { %3834 = shalt.err (!%p3831_p13)
}
 0xf44   : > { %s3907_s9 = smov 128   ;;  %s4765_s2 = smov 8  }
 0xf45   : > { %3433 = dma.vmem_to_hbm [thread:$0]  (%p4764_p9), %s4662_s10, 512, %s4668_s24, %s2837_s14, %s3907_s9, %s3907_s9, %s4765_s2  }
 0xf46 PF: > { %s2865_s15 = sand.u32 1, %s3873_s25   ;;  %p4766_p1 = scmp.ne.s32.totalorder %s4750_s17, 0 }
 0xf47   : > { %p4767_p3 = scmp.ge.s32.totalorder %s3885_s28, 2  ;;  %s2866_s30 = scalar_lea.sflag [#allocation5], %s2865_s15 }
 0xf49   : > { %p3459_p2 = pnand %p4767_p3, %p4766_p1 }
 0xf4b   : > { %3868 = dma.done.wait (!%p3459_p2), %s2866_s30, 512  }
 0xf4c   : > { %3870 = vsyncadd (!%p3459_p2), %s2866_s30, 4294966784  ;;  %p29_p8 = scmp.ge.s32.totalorder %s4165_s16, 4   ;;  %s4768_s25 = smov %s3877_s26 }
 0xf4d   : > { %s4769_s26 = smov %s3881_s27  ;;  %s4770_s27 = smov %s4176_s21 }
 0xf4e   : > { %s4771_s28 = smov %s4165_s16  ;;  %31 = sbr.rel (!%p29_p8) target bundleno = 14 (0xe), region = 141 }
 0xf55   :  { %2871 = vsyncpa [#allocation4], 1 }
 0xf56   :  { %2873 = vsyncpa [#allocation4 + $0x1], 1 }
 0xf57   :  { %2874 = vsyncpa [#allocation7], 1 }
 0xf58   :  { %2875 = vsyncpa [#allocation10], 1 }
 0xf59   :  { %2876 = vsyncpa [#allocation13], 1 }
 0xf5a   :  { %2877 = vsyncpa [#allocation5], 1 }
 0xf5b   :  { %2879 = vsyncpa [#allocation5 + $0x1], 1 }

</bundles_post_ra>
